<compile_context>
chip_gen: v7x
topology: tpu7x:2x2x1
jax: 0.10.0
libtpu: 0.0.40
codegen_flags: <defaults>
</compile_context>

<pallas_src>
import functools
import math

import jax
import jax.numpy as jnp
from jax import lax
from jax.experimental import pallas as pl
from jax.experimental.pallas import tpu as pltpu


# ----------------------------------------------------------------------------
# Fused Pallas kernel: all layers, TT time steps per grid step
# ----------------------------------------------------------------------------
def _fused_snn_kernel(*refs, n_hidden, tt, bp, mm_tt, alpha, beta,
                      hidden_p, dout_p):
    """refs = (x_ref, w_0 .. w_n_hidden, out_ref,
               syn_0, mem_0, ..., syn_{n-1}, mem_{n-1}, flt, vout,
               act_scr, h_scr)

    x_ref   : (TT*BP, DinP)  time-major, lane-padded input slab
    w_l     : (InP_l, OutP_l) lane-padded weights, resident in VMEM
    out_ref : (TT*BP, DoutP)  readout membrane potentials for this time block
    state   : per-layer syn/mem + flt/vout carries (persist across grid steps)
    act_scr : (TT*BP, max hidden width)   spike slab of the current layer
    h_scr   : (TT*BP, max(hidden, Dout))  matmul result of the current layer
    """
    n_w = n_hidden + 1
    x_ref = refs[0]
    w_refs = refs[1:1 + n_w]
    out_ref = refs[1 + n_w]
    scratch = refs[2 + n_w:]
    state = scratch[:2 * n_hidden + 2]
    act_scr = scratch[2 * n_hidden + 2]
    h_scr = scratch[2 * n_hidden + 3]

    rows = tt * bp
    mm_rows = mm_tt * bp
    n_chunks = rows // mm_rows

    # ---- zero the recurrence state on the first time block ----------------
    @pl.when(pl.program_id(0) == 0)
    def _():
        for s_ref in state:
            s_ref[...] = jnp.zeros_like(s_ref)

    # ---- tall, row-chunked matmul into h_scr (bounds vreg pressure) -------
    def mm_into_h(lhs_ref, in_w, w_ref, out_w):
        w = w_ref[...]

        def one(r0):
            a = lhs_ref[pl.ds(r0, mm_rows), :in_w]
            h_scr[pl.ds(r0, mm_rows), :out_w] = jnp.dot(
                a, w, preferred_element_type=jnp.float32)

        if n_chunks == 1:
            one(0)
        else:
            def body(c, carry):
                one(pl.multiple_of(c * mm_rows, 8))
                return carry
            lax.fori_loop(0, n_chunks, body, 0)

    # ---- hidden spiking layers --------------------------------------------
    in_ref, in_w = x_ref, x_ref.shape[1]
    for l in range(n_hidden):
        out_w = hidden_p[l]
        mm_into_h(in_ref, in_w, w_refs[l], out_w)
        syn_ref, mem_ref = state[2 * l], state[2 * l + 1]

        def step(s, carry, out_w=out_w):
            syn, mem = carry
            r0 = pl.multiple_of(s * bp, 8)
            h_s = h_scr[pl.ds(r0, bp), :out_w]            # aligned (BP, H) slab
            spk = jnp.where(mem - 1.0 > 0.0, 1.0, 0.0)    # heaviside (fwd)
            act_scr[pl.ds(r0, bp), :out_w] = spk          # spike slab -> VMEM
            new_syn = alpha * syn + h_s
            new_mem = (beta * mem + syn) * (1.0 - spk)    # reset on spike
            return new_syn, new_mem

        syn, mem = lax.fori_loop(0, tt, step, (syn_ref[...], mem_ref[...]),
                                 unroll=min(tt, 8))
        syn_ref[...], mem_ref[...] = syn, mem
        in_ref, in_w = act_scr, out_w

    # ---- readout membrane layer (no spikes) --------------------------------
    mm_into_h(in_ref, in_w, w_refs[n_hidden], dout_p)
    flt_ref, vout_ref = state[2 * n_hidden], state[2 * n_hidden + 1]

    def ro_step(s, carry):
        flt, vout = carry
        r0 = pl.multiple_of(s * bp, 8)
        h_s = h_scr[pl.ds(r0, bp), :dout_p]
        new_flt = alpha * flt + h_s
        new_out = beta * vout + flt                       # uses OLD flt
        out_ref[pl.ds(r0, bp), :] = new_out.astype(out_ref.dtype)
        return new_flt, new_out

    flt, vout = lax.fori_loop(0, tt, ro_step, (flt_ref[...], vout_ref[...]),
                              unroll=min(tt, 8))
    flt_ref[...], vout_ref[...] = flt, vout


# ----------------------------------------------------------------------------
# Planning helpers
# ----------------------------------------------------------------------------
def _round_up(v, m):
    return ((v + m - 1) // m) * m


def _largest_divisor_leq(n, cap):
    for d in range(min(n, max(cap, 1)), 0, -1):
        if n % d == 0:
            return d
    return 1


def _plan_time_block(T, BP, DinP, hidden_p, DoutP,
                     budget_bytes=24 << 20, tt_cap=256):
    """Pick TT from a full VMEM budget (double-buffered I/O blocks + weights +
    act/h scratch + state carries). Returns (TT, estimated VMEM bytes)."""
    f32 = 4
    act_w = max(hidden_p)
    h_w = max(hidden_p + [DoutP])
    per_tt = BP * f32 * (2 * DinP + 2 * DoutP + act_w + h_w)

    dims_p = [DinP] + list(hidden_p) + [DoutP]
    w_bytes = sum(2 * a * b * f32 for a, b in zip(dims_p[:-1], dims_p[1:]))
    state_bytes = sum(2 * BP * h * f32 for h in hidden_p) + 2 * BP * DoutP * f32
    fixed = w_bytes + state_bytes

    tt = max(1, min(T, tt_cap, (budget_bytes - fixed) // per_tt))
    need = fixed + tt * per_tt
    return tt, need


# ----------------------------------------------------------------------------
# SNN module: deterministic init + forward
# ----------------------------------------------------------------------------
def as_list(x):
    return x if isinstance(x, list) else [x]


def snn_init(key, prms):
    """Deterministic weight init: N(0, 1/sqrt(fan_in)) per layer (spytorch-style)."""
    sizes = [prms["nb_inputs"]] + as_list(prms["nb_hidden"]) + [prms["nb_outputs"]]
    weights = []
    for i in range(len(sizes) - 1):
        key, sub = jax.random.split(key)
        fan_in = sizes[i]
        w = jax.random.normal(sub, (sizes[i], sizes[i + 1]), dtype=jnp.float32)
        weights.append(w * (1.0 / math.sqrt(fan_in)))
    return weights


def snn_forward(weights, x_btd, prms):
    """x_btd: (B, T, nb_inputs) -> (B, T, nb_outputs), all float32."""
    dt = prms["time_step"]
    alpha = float(math.exp(-dt / prms["tau_syn"]))
    beta = float(math.exp(-dt / prms["tau_mem"]))

    B, T, Din = x_btd.shape
    n_hidden = len(weights) - 1
    hidden = [w.shape[1] for w in weights[:-1]]
    Dout = weights[-1].shape[1]

    LANE = 128
    DinP = _round_up(Din, LANE)
    hidden_p = [_round_up(h, LANE) for h in hidden]
    DoutP = _round_up(Dout, LANE)
    # Pad batch to a sublane multiple. NOTE: at B=2 -> BP=8, 6/8 rows are
    # padding; batch more sequences per call for real throughput.
    BP = _round_up(B, 8)

    # Zero-pad weights to lane-dense shapes (exact numerical no-op).
    dims = [Din] + hidden + [Dout]
    dims_p = [DinP] + hidden_p + [DoutP]
    weights_p = [
        jnp.pad(w.astype(jnp.float32),
                ((0, dims_p[i] - dims[i]), (0, dims_p[i + 1] - dims[i + 1])))
        for i, w in enumerate(weights)
    ]

    TT, need = _plan_time_block(T, BP, DinP, hidden_p, DoutP)
    NT = -(-T // TT)
    TP = NT * TT                                   # pad T (extra steps sliced off)
    mm_tt = _largest_divisor_leq(TT, max(1, 256 // BP))   # <=256 rows per dot

    # Time-major, fully padded input slab (TP*BP, DinP). For long sequences,
    # pass the input time-major upstream to avoid this extra HBM pass.
    x = jnp.transpose(x_btd, (1, 0, 2)).astype(jnp.float32)        # (T, B, Din)
    x = jnp.pad(x, ((0, TP - T), (0, BP - B), (0, DinP - Din)))
    x2d = x.reshape(TP * BP, DinP)

    kernel = functools.partial(
        _fused_snn_kernel, n_hidden=n_hidden, tt=TT, bp=BP, mm_tt=mm_tt,
        alpha=alpha, beta=beta, hidden_p=tuple(hidden_p), dout_p=DoutP)

    in_specs = [pl.BlockSpec((TT * BP, DinP), lambda t: (t, 0))]
    # Weight blocks are grid-invariant (index_map constant); single-buffering
    # them (pl.Buffered(1)) would save VMEM for big layers.
    in_specs += [pl.BlockSpec(w.shape, lambda t: (0, 0)) for w in weights_p]

    act_w = max(hidden_p)
    h_w = max(hidden_p + [DoutP])
    scratch = []
    for hp in hidden_p:
        scratch += [pltpu.VMEM((BP, hp), jnp.float32),   # syn carry
                    pltpu.VMEM((BP, hp), jnp.float32)]   # mem carry
    scratch += [pltpu.VMEM((BP, DoutP), jnp.float32),    # flt carry
                pltpu.VMEM((BP, DoutP), jnp.float32)]    # vout carry
    scratch += [pltpu.VMEM((TT * BP, act_w), jnp.float32),   # spike slab
                pltpu.VMEM((TT * BP, h_w), jnp.float32)]     # matmul slab

    vmem_limit = int(min(max(2 * need + (4 << 20), 32 << 20), 48 << 20))

    out2d = pl.pallas_call(
        kernel,
        out_shape=jax.ShapeDtypeStruct((TP * BP, DoutP), jnp.float32),
        grid_spec=pltpu.PrefetchScalarGridSpec(
            num_scalar_prefetch=0,
            grid=(NT,),
            in_specs=in_specs,
            out_specs=pl.BlockSpec((TT * BP, DoutP), lambda t: (t, 0)),
            scratch_shapes=scratch,
        ),
        compiler_params=pltpu.CompilerParams(
            dimension_semantics=("arbitrary",),   # time recurrence is sequential
            vmem_limit_bytes=vmem_limit,
        ),
    )(x2d, *weights_p)

    out = out2d.reshape(TP, BP, DoutP)[:T, :B, :Dout]
    return jnp.transpose(out, (1, 0, 2))                  # -> (B, T, nb_outputs)


# ----------------------------------------------------------------------------
# Pure-JAX reference (for correctness check)
# ----------------------------------------------------------------------------
def _ref_forward(weights, x_btd, prms):
    dt = prms["time_step"]
    alpha = math.exp(-dt / prms["tau_syn"])
    beta = math.exp(-dt / prms["tau_mem"])
    B, T, _ = x_btd.shape

    s = x_btd.astype(jnp.float32)
    for w in weights[:-1]:
        h = jnp.einsum("btd,de->bte", s, w)
        syn = jnp.zeros((B, w.shape[1]), jnp.float32)
        mem = jnp.zeros((B, w.shape[1]), jnp.float32)
        spks = []
        for t in range(T):
            out = (mem - 1.0 > 0.0).astype(jnp.float32)
            new_syn = alpha * syn + h[:, t]
            new_mem = (beta * mem + syn) * (1.0 - out)
            spks.append(out)
            syn, mem = new_syn, new_mem
        s = jnp.stack(spks, axis=1)

    w = weights[-1]
    h = jnp.einsum("btd,de->bte", s, w)
    flt = jnp.zeros((B, w.shape[1]), jnp.float32)
    vout = jnp.zeros((B, w.shape[1]), jnp.float32)
    outs = []
    for t in range(T):
        flt, vout = alpha * flt + h[:, t], beta * vout + flt
        outs.append(vout)
    return jnp.stack(outs, axis=1)


# ----------------------------------------------------------------------------
if __name__ == "__main__":
    prms = {
        "nb_inputs": 16,
        "nb_hidden": [32, 32],
        "nb_outputs": 4,
        "time_step": 1e-3,
        "tau_syn": 5e-3,
        "tau_mem": 10e-3,
    }
    B, T = 2, 8

    key = jax.random.PRNGKey(0)
    k_x, k_w = jax.random.split(key)

    # Poisson-like binary spike input, shape (batch, time, nb_inputs)
    x = (jax.random.uniform(k_x, (B, T, prms["nb_inputs"])) < 0.3).astype(jnp.float32)

    weights = snn_init(k_w, prms)

    y = jax.block_until_ready(snn_forward(weights, x, prms))

    y_ref = _ref_forward(weights, x, prms)
    assert y.shape == (B, T, prms["nb_outputs"])
    assert jnp.allclose(y, y_ref, atol=1e-4, rtol=1e-4)

    print("KERNEL_OK")
</pallas_src>

<mosaic_0001>
module attributes {stable_mosaic.version = 11 : i64} {
  func.func @_fused_snn_kernel(%arg0: i32, %arg1: memref<64x128xf32, #tpu.memory_space<vmem>>, %arg2: memref<128x128xf32, #tpu.memory_space<vmem>>, %arg3: memref<128x128xf32, #tpu.memory_space<vmem>>, %arg4: memref<128x128xf32, #tpu.memory_space<vmem>>, %arg5: memref<64x128xf32, #tpu.memory_space<vmem>>, %arg6: memref<8x128xf32, #tpu.memory_space<vmem>>, %arg7: memref<8x128xf32, #tpu.memory_space<vmem>>, %arg8: memref<8x128xf32, #tpu.memory_space<vmem>>, %arg9: memref<8x128xf32, #tpu.memory_space<vmem>>, %arg10: memref<8x128xf32, #tpu.memory_space<vmem>>, %arg11: memref<8x128xf32, #tpu.memory_space<vmem>>, %arg12: memref<64x128xf32, #tpu.memory_space<vmem>>, %arg13: memref<64x128xf32, #tpu.memory_space<vmem>>) attributes {dimension_semantics = [#tpu.dimension_semantics<arbitrary>], iteration_bounds = array<i64: 1>, scalar_prefetch = 0 : i64, scratch_operands = 8 : i64, tpu.core_type = #tpu.core_type<tc>, window_params = [{transform_indices = @transform_0, window_bounds = array<i64: 64, 128>}, {pipeline_mode = #tpu.pipeline_mode<synchronous>, transform_indices = @transform_1, window_bounds = array<i64: 128, 128>}, {pipeline_mode = #tpu.pipeline_mode<synchronous>, transform_indices = @transform_2, window_bounds = array<i64: 128, 128>}, {pipeline_mode = #tpu.pipeline_mode<synchronous>, transform_indices = @transform_3, window_bounds = array<i64: 128, 128>}, {transform_indices = @transform_4, window_bounds = array<i64: 64, 128>}]} {
    %c0_i32 = arith.constant 0 : i32
    %0 = arith.cmpi eq, %arg0, %c0_i32 : i32
    %1 = arith.extui %0 : i1 to i32
    %c0_i32_0 = arith.constant 0 : i32
    %2 = arith.cmpi ne, %1, %c0_i32_0 : i32
    scf.if %2 {
      %cst_263 = arith.constant 0.000000e+00 : f32
      %475 = vector.broadcast %cst_263 : f32 to vector<8x128xf32>
      %c0_264 = arith.constant 0 : index
      %c0_265 = arith.constant 0 : index
      %476 = vector.load %arg6[%c0_264, %c0_265] : memref<8x128xf32, #tpu.memory_space<vmem>>, vector<8x128xf32>
      tpu.vector_store %arg6[%c0_264, %c0_265], %475 {strides = array<i32>} : memref<8x128xf32, #tpu.memory_space<vmem>>, vector<8x128xf32>,
      %cst_266 = arith.constant 0.000000e+00 : f32
      %477 = vector.broadcast %cst_266 : f32 to vector<8x128xf32>
      %c0_267 = arith.constant 0 : index
      %c0_268 = arith.constant 0 : index
      %478 = vector.load %arg7[%c0_267, %c0_268] : memref<8x128xf32, #tpu.memory_space<vmem>>, vector<8x128xf32>
      tpu.vector_store %arg7[%c0_267, %c0_268], %477 {strides = array<i32>} : memref<8x128xf32, #tpu.memory_space<vmem>>, vector<8x128xf32>,
      %cst_269 = arith.constant 0.000000e+00 : f32
      %479 = vector.broadcast %cst_269 : f32 to vector<8x128xf32>
      %c0_270 = arith.constant 0 : index
      %c0_271 = arith.constant 0 : index
      %480 = vector.load %arg8[%c0_270, %c0_271] : memref<8x128xf32, #tpu.memory_space<vmem>>, vector<8x128xf32>
      tpu.vector_store %arg8[%c0_270, %c0_271], %479 {strides = array<i32>} : memref<8x128xf32, #tpu.memory_space<vmem>>, vector<8x128xf32>,
      %cst_272 = arith.constant 0.000000e+00 : f32
      %481 = vector.broadcast %cst_272 : f32 to vector<8x128xf32>
      %c0_273 = arith.constant 0 : index
      %c0_274 = arith.constant 0 : index
      %482 = vector.load %arg9[%c0_273, %c0_274] : memref<8x128xf32, #tpu.memory_space<vmem>>, vector<8x128xf32>
      tpu.vector_store %arg9[%c0_273, %c0_274], %481 {strides = array<i32>} : memref<8x128xf32, #tpu.memory_space<vmem>>, vector<8x128xf32>,
      %cst_275 = arith.constant 0.000000e+00 : f32
      %483 = vector.broadcast %cst_275 : f32 to vector<8x128xf32>
      %c0_276 = arith.constant 0 : index
      %c0_277 = arith.constant 0 : index
      %484 = vector.load %arg10[%c0_276, %c0_277] : memref<8x128xf32, #tpu.memory_space<vmem>>, vector<8x128xf32>
      tpu.vector_store %arg10[%c0_276, %c0_277], %483 {strides = array<i32>} : memref<8x128xf32, #tpu.memory_space<vmem>>, vector<8x128xf32>,
      %cst_278 = arith.constant 0.000000e+00 : f32
      %485 = vector.broadcast %cst_278 : f32 to vector<8x128xf32>
      %c0_279 = arith.constant 0 : index
      %c0_280 = arith.constant 0 : index
      %486 = vector.load %arg11[%c0_279, %c0_280] : memref<8x128xf32, #tpu.memory_space<vmem>>, vector<8x128xf32>
      tpu.vector_store %arg11[%c0_279, %c0_280], %485 {strides = array<i32>} : memref<8x128xf32, #tpu.memory_space<vmem>>, vector<8x128xf32>,
    } else {
    }
    %c0 = arith.constant 0 : index
    %c0_1 = arith.constant 0 : index
    %3 = vector.load %arg2[%c0, %c0_1] : memref<128x128xf32, #tpu.memory_space<vmem>>, vector<128x128xf32>
    %c0_2 = arith.constant 0 : index
    %c0_3 = arith.constant 0 : index
    %4 = vector.load %arg1[%c0_2, %c0_3] : memref<64x128xf32, #tpu.memory_space<vmem>>, vector<64x128xf32>
    %cst = arith.constant dense<0.000000e+00> : vector<64x128xf32>
    %5 = tpu.matmul %4, %3, %cst {dimension_numbers = #tpu.dot_dimension_numbers<[1], [0], [0], [1], [0, 0, 1, 1], [], []>} : vector<64x128xf32>, vector<128x128xf32>, vector<64x128xf32> -> vector<64x128xf32>
    %c0_4 = arith.constant 0 : index
    %c0_5 = arith.constant 0 : index
    %6 = vector.load %arg13[%c0_4, %c0_5] : memref<64x128xf32, #tpu.memory_space<vmem>>, vector<64x128xf32>
    tpu.vector_store %arg13[%c0_4, %c0_5], %5 {strides = array<i32>} : memref<64x128xf32, #tpu.memory_space<vmem>>, vector<64x128xf32>,
    %c0_6 = arith.constant 0 : index
    %c0_7 = arith.constant 0 : index
    %7 = vector.load %arg6[%c0_6, %c0_7] : memref<8x128xf32, #tpu.memory_space<vmem>>, vector<8x128xf32>
    %c0_8 = arith.constant 0 : index
    %c0_9 = arith.constant 0 : index
    %8 = vector.load %arg7[%c0_8, %c0_9] : memref<8x128xf32, #tpu.memory_space<vmem>>, vector<8x128xf32>
    %c0_i32_10 = arith.constant 0 : i32
    %c8_i32 = arith.constant 8 : i32
    %9 = arith.muli %c0_i32_10, %c8_i32 : i32
    %10 = tpu.assume_multiple %9, 8 : i32
    %11 = arith.index_cast %10 : i32 to index
    %c0_11 = arith.constant 0 : index
    %12 = vector.load %arg13[%11, %c0_11] : memref<64x128xf32, #tpu.memory_space<vmem>>, vector<8x128xf32>
    %cst_12 = arith.constant 1.000000e+00 : f32
    %13 = vector.broadcast %cst_12 : f32 to vector<8x128xf32>
    %14 = arith.subf %8, %13 : vector<8x128xf32>
    %cst_13 = arith.constant 0.000000e+00 : f32
    %15 = vector.broadcast %cst_13 : f32 to vector<8x128xf32>
    %16 = arith.cmpf ogt, %14, %15 : vector<8x128xf32>
    %cst_14 = arith.constant 1.000000e+00 : f32
    %cst_15 = arith.constant 0.000000e+00 : f32
    %17 = vector.broadcast %cst_14 : f32 to vector<8x128xf32>
    %18 = vector.broadcast %cst_15 : f32 to vector<8x128xf32>
    %19 = arith.select %16, %17, %18 : vector<8x128xi1>, vector<8x128xf32>
    %20 = arith.index_cast %10 : i32 to index
    %c0_16 = arith.constant 0 : index
    %21 = vector.load %arg12[%20, %c0_16] : memref<64x128xf32, #tpu.memory_space<vmem>>, vector<8x128xf32>
    tpu.vector_store %arg12[%20, %c0_16], %19 {strides = array<i32>} : memref<64x128xf32, #tpu.memory_space<vmem>>, vector<8x128xf32>,
    %cst_17 = arith.constant 0.818730771 : f32
    %22 = vector.broadcast %cst_17 : f32 to vector<8x128xf32>
    %23 = arith.mulf %22, %7 : vector<8x128xf32>
    %24 = arith.addf %23, %12 : vector<8x128xf32>
    %cst_18 = arith.constant 0.904837429 : f32
    %25 = vector.broadcast %cst_18 : f32 to vector<8x128xf32>
    %26 = arith.mulf %25, %8 : vector<8x128xf32>
    %27 = arith.addf %26, %7 : vector<8x128xf32>
    %cst_19 = arith.constant 1.000000e+00 : f32
    %28 = vector.broadcast %cst_19 : f32 to vector<8x128xf32>
    %29 = arith.subf %28, %19 : vector<8x128xf32>
    %30 = arith.mulf %27, %29 : vector<8x128xf32>
    %c1_i32 = arith.constant 1 : i32
    %c8_i32_20 = arith.constant 8 : i32
    %31 = arith.muli %c1_i32, %c8_i32_20 : i32
    %32 = tpu.assume_multiple %31, 8 : i32
    %33 = arith.index_cast %32 : i32 to index
    %c0_21 = arith.constant 0 : index
    %34 = vector.load %arg13[%33, %c0_21] : memref<64x128xf32, #tpu.memory_space<vmem>>, vector<8x128xf32>
    %cst_22 = arith.constant 1.000000e+00 : f32
    %35 = vector.broadcast %cst_22 : f32 to vector<8x128xf32>
    %36 = arith.subf %30, %35 : vector<8x128xf32>
    %cst_23 = arith.constant 0.000000e+00 : f32
    %37 = vector.broadcast %cst_23 : f32 to vector<8x128xf32>
    %38 = arith.cmpf ogt, %36, %37 : vector<8x128xf32>
    %cst_24 = arith.constant 1.000000e+00 : f32
    %cst_25 = arith.constant 0.000000e+00 : f32
    %39 = vector.broadcast %cst_24 : f32 to vector<8x128xf32>
    %40 = vector.broadcast %cst_25 : f32 to vector<8x128xf32>
    %41 = arith.select %38, %39, %40 : vector<8x128xi1>, vector<8x128xf32>
    %42 = arith.index_cast %32 : i32 to index
    %c0_26 = arith.constant 0 : index
    %43 = vector.load %arg12[%42, %c0_26] : memref<64x128xf32, #tpu.memory_space<vmem>>, vector<8x128xf32>
    tpu.vector_store %arg12[%42, %c0_26], %41 {strides = array<i32>} : memref<64x128xf32, #tpu.memory_space<vmem>>, vector<8x128xf32>,
    %cst_27 = arith.constant 0.818730771 : f32
    %44 = vector.broadcast %cst_27 : f32 to vector<8x128xf32>
    %45 = arith.mulf %44, %24 : vector<8x128xf32>
    %46 = arith.addf %45, %34 : vector<8x128xf32>
    %cst_28 = arith.constant 0.904837429 : f32
    %47 = vector.broadcast %cst_28 : f32 to vector<8x128xf32>
    %48 = arith.mulf %47, %30 : vector<8x128xf32>
    %49 = arith.addf %48, %24 : vector<8x128xf32>
    %cst_29 = arith.constant 1.000000e+00 : f32
    %50 = vector.broadcast %cst_29 : f32 to vector<8x128xf32>
    %51 = arith.subf %50, %41 : vector<8x128xf32>
    %52 = arith.mulf %49, %51 : vector<8x128xf32>
    %c2_i32 = arith.constant 2 : i32
    %c8_i32_30 = arith.constant 8 : i32
    %53 = arith.muli %c2_i32, %c8_i32_30 : i32
    %54 = tpu.assume_multiple %53, 8 : i32
    %55 = arith.index_cast %54 : i32 to index
    %c0_31 = arith.constant 0 : index
    %56 = vector.load %arg13[%55, %c0_31] : memref<64x128xf32, #tpu.memory_space<vmem>>, vector<8x128xf32>
    %cst_32 = arith.constant 1.000000e+00 : f32
    %57 = vector.broadcast %cst_32 : f32 to vector<8x128xf32>
    %58 = arith.subf %52, %57 : vector<8x128xf32>
    %cst_33 = arith.constant 0.000000e+00 : f32
    %59 = vector.broadcast %cst_33 : f32 to vector<8x128xf32>
    %60 = arith.cmpf ogt, %58, %59 : vector<8x128xf32>
    %cst_34 = arith.constant 1.000000e+00 : f32
    %cst_35 = arith.constant 0.000000e+00 : f32
    %61 = vector.broadcast %cst_34 : f32 to vector<8x128xf32>
    %62 = vector.broadcast %cst_35 : f32 to vector<8x128xf32>
    %63 = arith.select %60, %61, %62 : vector<8x128xi1>, vector<8x128xf32>
    %64 = arith.index_cast %54 : i32 to index
    %c0_36 = arith.constant 0 : index
    %65 = vector.load %arg12[%64, %c0_36] : memref<64x128xf32, #tpu.memory_space<vmem>>, vector<8x128xf32>
    tpu.vector_store %arg12[%64, %c0_36], %63 {strides = array<i32>} : memref<64x128xf32, #tpu.memory_space<vmem>>, vector<8x128xf32>,
    %cst_37 = arith.constant 0.818730771 : f32
    %66 = vector.broadcast %cst_37 : f32 to vector<8x128xf32>
    %67 = arith.mulf %66, %46 : vector<8x128xf32>
    %68 = arith.addf %67, %56 : vector<8x128xf32>
    %cst_38 = arith.constant 0.904837429 : f32
    %69 = vector.broadcast %cst_38 : f32 to vector<8x128xf32>
    %70 = arith.mulf %69, %52 : vector<8x128xf32>
    %71 = arith.addf %70, %46 : vector<8x128xf32>
    %cst_39 = arith.constant 1.000000e+00 : f32
    %72 = vector.broadcast %cst_39 : f32 to vector<8x128xf32>
    %73 = arith.subf %72, %63 : vector<8x128xf32>
    %74 = arith.mulf %71, %73 : vector<8x128xf32>
    %c3_i32 = arith.constant 3 : i32
    %c8_i32_40 = arith.constant 8 : i32
    %75 = arith.muli %c3_i32, %c8_i32_40 : i32
    %76 = tpu.assume_multiple %75, 8 : i32
    %77 = arith.index_cast %76 : i32 to index
    %c0_41 = arith.constant 0 : index
    %78 = vector.load %arg13[%77, %c0_41] : memref<64x128xf32, #tpu.memory_space<vmem>>, vector<8x128xf32>
    %cst_42 = arith.constant 1.000000e+00 : f32
    %79 = vector.broadcast %cst_42 : f32 to vector<8x128xf32>
    %80 = arith.subf %74, %79 : vector<8x128xf32>
    %cst_43 = arith.constant 0.000000e+00 : f32
    %81 = vector.broadcast %cst_43 : f32 to vector<8x128xf32>
    %82 = arith.cmpf ogt, %80, %81 : vector<8x128xf32>
    %cst_44 = arith.constant 1.000000e+00 : f32
    %cst_45 = arith.constant 0.000000e+00 : f32
    %83 = vector.broadcast %cst_44 : f32 to vector<8x128xf32>
    %84 = vector.broadcast %cst_45 : f32 to vector<8x128xf32>
    %85 = arith.select %82, %83, %84 : vector<8x128xi1>, vector<8x128xf32>
    %86 = arith.index_cast %76 : i32 to index
    %c0_46 = arith.constant 0 : index
    %87 = vector.load %arg12[%86, %c0_46] : memref<64x128xf32, #tpu.memory_space<vmem>>, vector<8x128xf32>
    tpu.vector_store %arg12[%86, %c0_46], %85 {strides = array<i32>} : memref<64x128xf32, #tpu.memory_space<vmem>>, vector<8x128xf32>,
    %cst_47 = arith.constant 0.818730771 : f32
    %88 = vector.broadcast %cst_47 : f32 to vector<8x128xf32>
    %89 = arith.mulf %88, %68 : vector<8x128xf32>
    %90 = arith.addf %89, %78 : vector<8x128xf32>
    %cst_48 = arith.constant 0.904837429 : f32
    %91 = vector.broadcast %cst_48 : f32 to vector<8x128xf32>
    %92 = arith.mulf %91, %74 : vector<8x128xf32>
    %93 = arith.addf %92, %68 : vector<8x128xf32>
    %cst_49 = arith.constant 1.000000e+00 : f32
    %94 = vector.broadcast %cst_49 : f32 to vector<8x128xf32>
    %95 = arith.subf %94, %85 : vector<8x128xf32>
    %96 = arith.mulf %93, %95 : vector<8x128xf32>
    %c4_i32 = arith.constant 4 : i32
    %c8_i32_50 = arith.constant 8 : i32
    %97 = arith.muli %c4_i32, %c8_i32_50 : i32
    %98 = tpu.assume_multiple %97, 8 : i32
    %99 = arith.index_cast %98 : i32 to index
    %c0_51 = arith.constant 0 : index
    %100 = vector.load %arg13[%99, %c0_51] : memref<64x128xf32, #tpu.memory_space<vmem>>, vector<8x128xf32>
    %cst_52 = arith.constant 1.000000e+00 : f32
    %101 = vector.broadcast %cst_52 : f32 to vector<8x128xf32>
    %102 = arith.subf %96, %101 : vector<8x128xf32>
    %cst_53 = arith.constant 0.000000e+00 : f32
    %103 = vector.broadcast %cst_53 : f32 to vector<8x128xf32>
    %104 = arith.cmpf ogt, %102, %103 : vector<8x128xf32>
    %cst_54 = arith.constant 1.000000e+00 : f32
    %cst_55 = arith.constant 0.000000e+00 : f32
    %105 = vector.broadcast %cst_54 : f32 to vector<8x128xf32>
    %106 = vector.broadcast %cst_55 : f32 to vector<8x128xf32>
    %107 = arith.select %104, %105, %106 : vector<8x128xi1>, vector<8x128xf32>
    %108 = arith.index_cast %98 : i32 to index
    %c0_56 = arith.constant 0 : index
    %109 = vector.load %arg12[%108, %c0_56] : memref<64x128xf32, #tpu.memory_space<vmem>>, vector<8x128xf32>
    tpu.vector_store %arg12[%108, %c0_56], %107 {strides = array<i32>} : memref<64x128xf32, #tpu.memory_space<vmem>>, vector<8x128xf32>,
    %cst_57 = arith.constant 0.818730771 : f32
    %110 = vector.broadcast %cst_57 : f32 to vector<8x128xf32>
    %111 = arith.mulf %110, %90 : vector<8x128xf32>
    %112 = arith.addf %111, %100 : vector<8x128xf32>
    %cst_58 = arith.constant 0.904837429 : f32
    %113 = vector.broadcast %cst_58 : f32 to vector<8x128xf32>
    %114 = arith.mulf %113, %96 : vector<8x128xf32>
    %115 = arith.addf %114, %90 : vector<8x128xf32>
    %cst_59 = arith.constant 1.000000e+00 : f32
    %116 = vector.broadcast %cst_59 : f32 to vector<8x128xf32>
    %117 = arith.subf %116, %107 : vector<8x128xf32>
    %118 = arith.mulf %115, %117 : vector<8x128xf32>
    %c5_i32 = arith.constant 5 : i32
    %c8_i32_60 = arith.constant 8 : i32
    %119 = arith.muli %c5_i32, %c8_i32_60 : i32
    %120 = tpu.assume_multiple %119, 8 : i32
    %121 = arith.index_cast %120 : i32 to index
    %c0_61 = arith.constant 0 : index
    %122 = vector.load %arg13[%121, %c0_61] : memref<64x128xf32, #tpu.memory_space<vmem>>, vector<8x128xf32>
    %cst_62 = arith.constant 1.000000e+00 : f32
    %123 = vector.broadcast %cst_62 : f32 to vector<8x128xf32>
    %124 = arith.subf %118, %123 : vector<8x128xf32>
    %cst_63 = arith.constant 0.000000e+00 : f32
    %125 = vector.broadcast %cst_63 : f32 to vector<8x128xf32>
    %126 = arith.cmpf ogt, %124, %125 : vector<8x128xf32>
    %cst_64 = arith.constant 1.000000e+00 : f32
    %cst_65 = arith.constant 0.000000e+00 : f32
    %127 = vector.broadcast %cst_64 : f32 to vector<8x128xf32>
    %128 = vector.broadcast %cst_65 : f32 to vector<8x128xf32>
    %129 = arith.select %126, %127, %128 : vector<8x128xi1>, vector<8x128xf32>
    %130 = arith.index_cast %120 : i32 to index
    %c0_66 = arith.constant 0 : index
    %131 = vector.load %arg12[%130, %c0_66] : memref<64x128xf32, #tpu.memory_space<vmem>>, vector<8x128xf32>
    tpu.vector_store %arg12[%130, %c0_66], %129 {strides = array<i32>} : memref<64x128xf32, #tpu.memory_space<vmem>>, vector<8x128xf32>,
    %cst_67 = arith.constant 0.818730771 : f32
    %132 = vector.broadcast %cst_67 : f32 to vector<8x128xf32>
    %133 = arith.mulf %132, %112 : vector<8x128xf32>
    %134 = arith.addf %133, %122 : vector<8x128xf32>
    %cst_68 = arith.constant 0.904837429 : f32
    %135 = vector.broadcast %cst_68 : f32 to vector<8x128xf32>
    %136 = arith.mulf %135, %118 : vector<8x128xf32>
    %137 = arith.addf %136, %112 : vector<8x128xf32>
    %cst_69 = arith.constant 1.000000e+00 : f32
    %138 = vector.broadcast %cst_69 : f32 to vector<8x128xf32>
    %139 = arith.subf %138, %129 : vector<8x128xf32>
    %140 = arith.mulf %137, %139 : vector<8x128xf32>
    %c6_i32 = arith.constant 6 : i32
    %c8_i32_70 = arith.constant 8 : i32
    %141 = arith.muli %c6_i32, %c8_i32_70 : i32
    %142 = tpu.assume_multiple %141, 8 : i32
    %143 = arith.index_cast %142 : i32 to index
    %c0_71 = arith.constant 0 : index
    %144 = vector.load %arg13[%143, %c0_71] : memref<64x128xf32, #tpu.memory_space<vmem>>, vector<8x128xf32>
    %cst_72 = arith.constant 1.000000e+00 : f32
    %145 = vector.broadcast %cst_72 : f32 to vector<8x128xf32>
    %146 = arith.subf %140, %145 : vector<8x128xf32>
    %cst_73 = arith.constant 0.000000e+00 : f32
    %147 = vector.broadcast %cst_73 : f32 to vector<8x128xf32>
    %148 = arith.cmpf ogt, %146, %147 : vector<8x128xf32>
    %cst_74 = arith.constant 1.000000e+00 : f32
    %cst_75 = arith.constant 0.000000e+00 : f32
    %149 = vector.broadcast %cst_74 : f32 to vector<8x128xf32>
    %150 = vector.broadcast %cst_75 : f32 to vector<8x128xf32>
    %151 = arith.select %148, %149, %150 : vector<8x128xi1>, vector<8x128xf32>
    %152 = arith.index_cast %142 : i32 to index
    %c0_76 = arith.constant 0 : index
    %153 = vector.load %arg12[%152, %c0_76] : memref<64x128xf32, #tpu.memory_space<vmem>>, vector<8x128xf32>
    tpu.vector_store %arg12[%152, %c0_76], %151 {strides = array<i32>} : memref<64x128xf32, #tpu.memory_space<vmem>>, vector<8x128xf32>,
    %cst_77 = arith.constant 0.818730771 : f32
    %154 = vector.broadcast %cst_77 : f32 to vector<8x128xf32>
    %155 = arith.mulf %154, %134 : vector<8x128xf32>
    %156 = arith.addf %155, %144 : vector<8x128xf32>
    %cst_78 = arith.constant 0.904837429 : f32
    %157 = vector.broadcast %cst_78 : f32 to vector<8x128xf32>
    %158 = arith.mulf %157, %140 : vector<8x128xf32>
    %159 = arith.addf %158, %134 : vector<8x128xf32>
    %cst_79 = arith.constant 1.000000e+00 : f32
    %160 = vector.broadcast %cst_79 : f32 to vector<8x128xf32>
    %161 = arith.subf %160, %151 : vector<8x128xf32>
    %162 = arith.mulf %159, %161 : vector<8x128xf32>
    %c7_i32 = arith.constant 7 : i32
    %c8_i32_80 = arith.constant 8 : i32
    %163 = arith.muli %c7_i32, %c8_i32_80 : i32
    %164 = tpu.assume_multiple %163, 8 : i32
    %165 = arith.index_cast %164 : i32 to index
    %c0_81 = arith.constant 0 : index
    %166 = vector.load %arg13[%165, %c0_81] : memref<64x128xf32, #tpu.memory_space<vmem>>, vector<8x128xf32>
    %cst_82 = arith.constant 1.000000e+00 : f32
    %167 = vector.broadcast %cst_82 : f32 to vector<8x128xf32>
    %168 = arith.subf %162, %167 : vector<8x128xf32>
    %cst_83 = arith.constant 0.000000e+00 : f32
    %169 = vector.broadcast %cst_83 : f32 to vector<8x128xf32>
    %170 = arith.cmpf ogt, %168, %169 : vector<8x128xf32>
    %cst_84 = arith.constant 1.000000e+00 : f32
    %cst_85 = arith.constant 0.000000e+00 : f32
    %171 = vector.broadcast %cst_84 : f32 to vector<8x128xf32>
    %172 = vector.broadcast %cst_85 : f32 to vector<8x128xf32>
    %173 = arith.select %170, %171, %172 : vector<8x128xi1>, vector<8x128xf32>
    %174 = arith.index_cast %164 : i32 to index
    %c0_86 = arith.constant 0 : index
    %175 = vector.load %arg12[%174, %c0_86] : memref<64x128xf32, #tpu.memory_space<vmem>>, vector<8x128xf32>
    tpu.vector_store %arg12[%174, %c0_86], %173 {strides = array<i32>} : memref<64x128xf32, #tpu.memory_space<vmem>>, vector<8x128xf32>,
    %cst_87 = arith.constant 0.818730771 : f32
    %176 = vector.broadcast %cst_87 : f32 to vector<8x128xf32>
    %177 = arith.mulf %176, %156 : vector<8x128xf32>
    %178 = arith.addf %177, %166 : vector<8x128xf32>
    %cst_88 = arith.constant 0.904837429 : f32
    %179 = vector.broadcast %cst_88 : f32 to vector<8x128xf32>
    %180 = arith.mulf %179, %162 : vector<8x128xf32>
    %181 = arith.addf %180, %156 : vector<8x128xf32>
    %cst_89 = arith.constant 1.000000e+00 : f32
    %182 = vector.broadcast %cst_89 : f32 to vector<8x128xf32>
    %183 = arith.subf %182, %173 : vector<8x128xf32>
    %184 = arith.mulf %181, %183 : vector<8x128xf32>
    %c8_i32_90 = arith.constant 8 : i32
    %c0_91 = arith.constant 0 : index
    %c0_92 = arith.constant 0 : index
    %185 = vector.load %arg6[%c0_91, %c0_92] : memref<8x128xf32, #tpu.memory_space<vmem>>, vector<8x128xf32>
    tpu.vector_store %arg6[%c0_91, %c0_92], %178 {strides = array<i32>} : memref<8x128xf32, #tpu.memory_space<vmem>>, vector<8x128xf32>,
    %c0_93 = arith.constant 0 : index
    %c0_94 = arith.constant 0 : index
    %186 = vector.load %arg7[%c0_93, %c0_94] : memref<8x128xf32, #tpu.memory_space<vmem>>, vector<8x128xf32>
    tpu.vector_store %arg7[%c0_93, %c0_94], %184 {strides = array<i32>} : memref<8x128xf32, #tpu.memory_space<vmem>>, vector<8x128xf32>,
    %c0_95 = arith.constant 0 : index
    %c0_96 = arith.constant 0 : index
    %187 = vector.load %arg3[%c0_95, %c0_96] : memref<128x128xf32, #tpu.memory_space<vmem>>, vector<128x128xf32>
    %c0_97 = arith.constant 0 : index
    %c0_98 = arith.constant 0 : index
    %188 = vector.load %arg12[%c0_97, %c0_98] : memref<64x128xf32, #tpu.memory_space<vmem>>, vector<64x128xf32>
    %cst_99 = arith.constant dense<0.000000e+00> : vector<64x128xf32>
    %189 = tpu.matmul %188, %187, %cst_99 {dimension_numbers = #tpu.dot_dimension_numbers<[1], [0], [0], [1], [0, 0, 1, 1], [], []>} : vector<64x128xf32>, vector<128x128xf32>, vector<64x128xf32> -> vector<64x128xf32>
    %c0_100 = arith.constant 0 : index
    %c0_101 = arith.constant 0 : index
    %190 = vector.load %arg13[%c0_100, %c0_101] : memref<64x128xf32, #tpu.memory_space<vmem>>, vector<64x128xf32>
    tpu.vector_store %arg13[%c0_100, %c0_101], %189 {strides = array<i32>} : memref<64x128xf32, #tpu.memory_space<vmem>>, vector<64x128xf32>,
    %c0_102 = arith.constant 0 : index
    %c0_103 = arith.constant 0 : index
    %191 = vector.load %arg8[%c0_102, %c0_103] : memref<8x128xf32, #tpu.memory_space<vmem>>, vector<8x128xf32>
    %c0_104 = arith.constant 0 : index
    %c0_105 = arith.constant 0 : index
    %192 = vector.load %arg9[%c0_104, %c0_105] : memref<8x128xf32, #tpu.memory_space<vmem>>, vector<8x128xf32>
    %c0_i32_106 = arith.constant 0 : i32
    %c8_i32_107 = arith.constant 8 : i32
    %193 = arith.muli %c0_i32_106, %c8_i32_107 : i32
    %194 = tpu.assume_multiple %193, 8 : i32
    %195 = arith.index_cast %194 : i32 to index
    %c0_108 = arith.constant 0 : index
    %196 = vector.load %arg13[%195, %c0_108] : memref<64x128xf32, #tpu.memory_space<vmem>>, vector<8x128xf32>
    %cst_109 = arith.constant 1.000000e+00 : f32
    %197 = vector.broadcast %cst_109 : f32 to vector<8x128xf32>
    %198 = arith.subf %192, %197 : vector<8x128xf32>
    %cst_110 = arith.constant 0.000000e+00 : f32
    %199 = vector.broadcast %cst_110 : f32 to vector<8x128xf32>
    %200 = arith.cmpf ogt, %198, %199 : vector<8x128xf32>
    %cst_111 = arith.constant 1.000000e+00 : f32
    %cst_112 = arith.constant 0.000000e+00 : f32
    %201 = vector.broadcast %cst_111 : f32 to vector<8x128xf32>
    %202 = vector.broadcast %cst_112 : f32 to vector<8x128xf32>
    %203 = arith.select %200, %201, %202 : vector<8x128xi1>, vector<8x128xf32>
    %204 = arith.index_cast %194 : i32 to index
    %c0_113 = arith.constant 0 : index
    %205 = vector.load %arg12[%204, %c0_113] : memref<64x128xf32, #tpu.memory_space<vmem>>, vector<8x128xf32>
    tpu.vector_store %arg12[%204, %c0_113], %203 {strides = array<i32>} : memref<64x128xf32, #tpu.memory_space<vmem>>, vector<8x128xf32>,
    %cst_114 = arith.constant 0.818730771 : f32
    %206 = vector.broadcast %cst_114 : f32 to vector<8x128xf32>
    %207 = arith.mulf %206, %191 : vector<8x128xf32>
    %208 = arith.addf %207, %196 : vector<8x128xf32>
    %cst_115 = arith.constant 0.904837429 : f32
    %209 = vector.broadcast %cst_115 : f32 to vector<8x128xf32>
    %210 = arith.mulf %209, %192 : vector<8x128xf32>
    %211 = arith.addf %210, %191 : vector<8x128xf32>
    %cst_116 = arith.constant 1.000000e+00 : f32
    %212 = vector.broadcast %cst_116 : f32 to vector<8x128xf32>
    %213 = arith.subf %212, %203 : vector<8x128xf32>
    %214 = arith.mulf %211, %213 : vector<8x128xf32>
    %c1_i32_117 = arith.constant 1 : i32
    %c8_i32_118 = arith.constant 8 : i32
    %215 = arith.muli %c1_i32_117, %c8_i32_118 : i32
    %216 = tpu.assume_multiple %215, 8 : i32
    %217 = arith.index_cast %216 : i32 to index
    %c0_119 = arith.constant 0 : index
    %218 = vector.load %arg13[%217, %c0_119] : memref<64x128xf32, #tpu.memory_space<vmem>>, vector<8x128xf32>
    %cst_120 = arith.constant 1.000000e+00 : f32
    %219 = vector.broadcast %cst_120 : f32 to vector<8x128xf32>
    %220 = arith.subf %214, %219 : vector<8x128xf32>
    %cst_121 = arith.constant 0.000000e+00 : f32
    %221 = vector.broadcast %cst_121 : f32 to vector<8x128xf32>
    %222 = arith.cmpf ogt, %220, %221 : vector<8x128xf32>
    %cst_122 = arith.constant 1.000000e+00 : f32
    %cst_123 = arith.constant 0.000000e+00 : f32
    %223 = vector.broadcast %cst_122 : f32 to vector<8x128xf32>
    %224 = vector.broadcast %cst_123 : f32 to vector<8x128xf32>
    %225 = arith.select %222, %223, %224 : vector<8x128xi1>, vector<8x128xf32>
    %226 = arith.index_cast %216 : i32 to index
    %c0_124 = arith.constant 0 : index
    %227 = vector.load %arg12[%226, %c0_124] : memref<64x128xf32, #tpu.memory_space<vmem>>, vector<8x128xf32>
    tpu.vector_store %arg12[%226, %c0_124], %225 {strides = array<i32>} : memref<64x128xf32, #tpu.memory_space<vmem>>, vector<8x128xf32>,
    %cst_125 = arith.constant 0.818730771 : f32
    %228 = vector.broadcast %cst_125 : f32 to vector<8x128xf32>
    %229 = arith.mulf %228, %208 : vector<8x128xf32>
    %230 = arith.addf %229, %218 : vector<8x128xf32>
    %cst_126 = arith.constant 0.904837429 : f32
    %231 = vector.broadcast %cst_126 : f32 to vector<8x128xf32>
    %232 = arith.mulf %231, %214 : vector<8x128xf32>
    %233 = arith.addf %232, %208 : vector<8x128xf32>
    %cst_127 = arith.constant 1.000000e+00 : f32
    %234 = vector.broadcast %cst_127 : f32 to vector<8x128xf32>
    %235 = arith.subf %234, %225 : vector<8x128xf32>
    %236 = arith.mulf %233, %235 : vector<8x128xf32>
    %c2_i32_128 = arith.constant 2 : i32
    %c8_i32_129 = arith.constant 8 : i32
    %237 = arith.muli %c2_i32_128, %c8_i32_129 : i32
    %238 = tpu.assume_multiple %237, 8 : i32
    %239 = arith.index_cast %238 : i32 to index
    %c0_130 = arith.constant 0 : index
    %240 = vector.load %arg13[%239, %c0_130] : memref<64x128xf32, #tpu.memory_space<vmem>>, vector<8x128xf32>
    %cst_131 = arith.constant 1.000000e+00 : f32
    %241 = vector.broadcast %cst_131 : f32 to vector<8x128xf32>
    %242 = arith.subf %236, %241 : vector<8x128xf32>
    %cst_132 = arith.constant 0.000000e+00 : f32
    %243 = vector.broadcast %cst_132 : f32 to vector<8x128xf32>
    %244 = arith.cmpf ogt, %242, %243 : vector<8x128xf32>
    %cst_133 = arith.constant 1.000000e+00 : f32
    %cst_134 = arith.constant 0.000000e+00 : f32
    %245 = vector.broadcast %cst_133 : f32 to vector<8x128xf32>
    %246 = vector.broadcast %cst_134 : f32 to vector<8x128xf32>
    %247 = arith.select %244, %245, %246 : vector<8x128xi1>, vector<8x128xf32>
    %248 = arith.index_cast %238 : i32 to index
    %c0_135 = arith.constant 0 : index
    %249 = vector.load %arg12[%248, %c0_135] : memref<64x128xf32, #tpu.memory_space<vmem>>, vector<8x128xf32>
    tpu.vector_store %arg12[%248, %c0_135], %247 {strides = array<i32>} : memref<64x128xf32, #tpu.memory_space<vmem>>, vector<8x128xf32>,
    %cst_136 = arith.constant 0.818730771 : f32
    %250 = vector.broadcast %cst_136 : f32 to vector<8x128xf32>
    %251 = arith.mulf %250, %230 : vector<8x128xf32>
    %252 = arith.addf %251, %240 : vector<8x128xf32>
    %cst_137 = arith.constant 0.904837429 : f32
    %253 = vector.broadcast %cst_137 : f32 to vector<8x128xf32>
    %254 = arith.mulf %253, %236 : vector<8x128xf32>
    %255 = arith.addf %254, %230 : vector<8x128xf32>
    %cst_138 = arith.constant 1.000000e+00 : f32
    %256 = vector.broadcast %cst_138 : f32 to vector<8x128xf32>
    %257 = arith.subf %256, %247 : vector<8x128xf32>
    %258 = arith.mulf %255, %257 : vector<8x128xf32>
    %c3_i32_139 = arith.constant 3 : i32
    %c8_i32_140 = arith.constant 8 : i32
    %259 = arith.muli %c3_i32_139, %c8_i32_140 : i32
    %260 = tpu.assume_multiple %259, 8 : i32
    %261 = arith.index_cast %260 : i32 to index
    %c0_141 = arith.constant 0 : index
    %262 = vector.load %arg13[%261, %c0_141] : memref<64x128xf32, #tpu.memory_space<vmem>>, vector<8x128xf32>
    %cst_142 = arith.constant 1.000000e+00 : f32
    %263 = vector.broadcast %cst_142 : f32 to vector<8x128xf32>
    %264 = arith.subf %258, %263 : vector<8x128xf32>
    %cst_143 = arith.constant 0.000000e+00 : f32
    %265 = vector.broadcast %cst_143 : f32 to vector<8x128xf32>
    %266 = arith.cmpf ogt, %264, %265 : vector<8x128xf32>
    %cst_144 = arith.constant 1.000000e+00 : f32
    %cst_145 = arith.constant 0.000000e+00 : f32
    %267 = vector.broadcast %cst_144 : f32 to vector<8x128xf32>
    %268 = vector.broadcast %cst_145 : f32 to vector<8x128xf32>
    %269 = arith.select %266, %267, %268 : vector<8x128xi1>, vector<8x128xf32>
    %270 = arith.index_cast %260 : i32 to index
    %c0_146 = arith.constant 0 : index
    %271 = vector.load %arg12[%270, %c0_146] : memref<64x128xf32, #tpu.memory_space<vmem>>, vector<8x128xf32>
    tpu.vector_store %arg12[%270, %c0_146], %269 {strides = array<i32>} : memref<64x128xf32, #tpu.memory_space<vmem>>, vector<8x128xf32>,
    %cst_147 = arith.constant 0.818730771 : f32
    %272 = vector.broadcast %cst_147 : f32 to vector<8x128xf32>
    %273 = arith.mulf %272, %252 : vector<8x128xf32>
    %274 = arith.addf %273, %262 : vector<8x128xf32>
    %cst_148 = arith.constant 0.904837429 : f32
    %275 = vector.broadcast %cst_148 : f32 to vector<8x128xf32>
    %276 = arith.mulf %275, %258 : vector<8x128xf32>
    %277 = arith.addf %276, %252 : vector<8x128xf32>
    %cst_149 = arith.constant 1.000000e+00 : f32
    %278 = vector.broadcast %cst_149 : f32 to vector<8x128xf32>
    %279 = arith.subf %278, %269 : vector<8x128xf32>
    %280 = arith.mulf %277, %279 : vector<8x128xf32>
    %c4_i32_150 = arith.constant 4 : i32
    %c8_i32_151 = arith.constant 8 : i32
    %281 = arith.muli %c4_i32_150, %c8_i32_151 : i32
    %282 = tpu.assume_multiple %281, 8 : i32
    %283 = arith.index_cast %282 : i32 to index
    %c0_152 = arith.constant 0 : index
    %284 = vector.load %arg13[%283, %c0_152] : memref<64x128xf32, #tpu.memory_space<vmem>>, vector<8x128xf32>
    %cst_153 = arith.constant 1.000000e+00 : f32
    %285 = vector.broadcast %cst_153 : f32 to vector<8x128xf32>
    %286 = arith.subf %280, %285 : vector<8x128xf32>
    %cst_154 = arith.constant 0.000000e+00 : f32
    %287 = vector.broadcast %cst_154 : f32 to vector<8x128xf32>
    %288 = arith.cmpf ogt, %286, %287 : vector<8x128xf32>
    %cst_155 = arith.constant 1.000000e+00 : f32
    %cst_156 = arith.constant 0.000000e+00 : f32
    %289 = vector.broadcast %cst_155 : f32 to vector<8x128xf32>
    %290 = vector.broadcast %cst_156 : f32 to vector<8x128xf32>
    %291 = arith.select %288, %289, %290 : vector<8x128xi1>, vector<8x128xf32>
    %292 = arith.index_cast %282 : i32 to index
    %c0_157 = arith.constant 0 : index
    %293 = vector.load %arg12[%292, %c0_157] : memref<64x128xf32, #tpu.memory_space<vmem>>, vector<8x128xf32>
    tpu.vector_store %arg12[%292, %c0_157], %291 {strides = array<i32>} : memref<64x128xf32, #tpu.memory_space<vmem>>, vector<8x128xf32>,
    %cst_158 = arith.constant 0.818730771 : f32
    %294 = vector.broadcast %cst_158 : f32 to vector<8x128xf32>
    %295 = arith.mulf %294, %274 : vector<8x128xf32>
    %296 = arith.addf %295, %284 : vector<8x128xf32>
    %cst_159 = arith.constant 0.904837429 : f32
    %297 = vector.broadcast %cst_159 : f32 to vector<8x128xf32>
    %298 = arith.mulf %297, %280 : vector<8x128xf32>
    %299 = arith.addf %298, %274 : vector<8x128xf32>
    %cst_160 = arith.constant 1.000000e+00 : f32
    %300 = vector.broadcast %cst_160 : f32 to vector<8x128xf32>
    %301 = arith.subf %300, %291 : vector<8x128xf32>
    %302 = arith.mulf %299, %301 : vector<8x128xf32>
    %c5_i32_161 = arith.constant 5 : i32
    %c8_i32_162 = arith.constant 8 : i32
    %303 = arith.muli %c5_i32_161, %c8_i32_162 : i32
    %304 = tpu.assume_multiple %303, 8 : i32
    %305 = arith.index_cast %304 : i32 to index
    %c0_163 = arith.constant 0 : index
    %306 = vector.load %arg13[%305, %c0_163] : memref<64x128xf32, #tpu.memory_space<vmem>>, vector<8x128xf32>
    %cst_164 = arith.constant 1.000000e+00 : f32
    %307 = vector.broadcast %cst_164 : f32 to vector<8x128xf32>
    %308 = arith.subf %302, %307 : vector<8x128xf32>
    %cst_165 = arith.constant 0.000000e+00 : f32
    %309 = vector.broadcast %cst_165 : f32 to vector<8x128xf32>
    %310 = arith.cmpf ogt, %308, %309 : vector<8x128xf32>
    %cst_166 = arith.constant 1.000000e+00 : f32
    %cst_167 = arith.constant 0.000000e+00 : f32
    %311 = vector.broadcast %cst_166 : f32 to vector<8x128xf32>
    %312 = vector.broadcast %cst_167 : f32 to vector<8x128xf32>
    %313 = arith.select %310, %311, %312 : vector<8x128xi1>, vector<8x128xf32>
    %314 = arith.index_cast %304 : i32 to index
    %c0_168 = arith.constant 0 : index
    %315 = vector.load %arg12[%314, %c0_168] : memref<64x128xf32, #tpu.memory_space<vmem>>, vector<8x128xf32>
    tpu.vector_store %arg12[%314, %c0_168], %313 {strides = array<i32>} : memref<64x128xf32, #tpu.memory_space<vmem>>, vector<8x128xf32>,
    %cst_169 = arith.constant 0.818730771 : f32
    %316 = vector.broadcast %cst_169 : f32 to vector<8x128xf32>
    %317 = arith.mulf %316, %296 : vector<8x128xf32>
    %318 = arith.addf %317, %306 : vector<8x128xf32>
    %cst_170 = arith.constant 0.904837429 : f32
    %319 = vector.broadcast %cst_170 : f32 to vector<8x128xf32>
    %320 = arith.mulf %319, %302 : vector<8x128xf32>
    %321 = arith.addf %320, %296 : vector<8x128xf32>
    %cst_171 = arith.constant 1.000000e+00 : f32
    %322 = vector.broadcast %cst_171 : f32 to vector<8x128xf32>
    %323 = arith.subf %322, %313 : vector<8x128xf32>
    %324 = arith.mulf %321, %323 : vector<8x128xf32>
    %c6_i32_172 = arith.constant 6 : i32
    %c8_i32_173 = arith.constant 8 : i32
    %325 = arith.muli %c6_i32_172, %c8_i32_173 : i32
    %326 = tpu.assume_multiple %325, 8 : i32
    %327 = arith.index_cast %326 : i32 to index
    %c0_174 = arith.constant 0 : index
    %328 = vector.load %arg13[%327, %c0_174] : memref<64x128xf32, #tpu.memory_space<vmem>>, vector<8x128xf32>
    %cst_175 = arith.constant 1.000000e+00 : f32
    %329 = vector.broadcast %cst_175 : f32 to vector<8x128xf32>
    %330 = arith.subf %324, %329 : vector<8x128xf32>
    %cst_176 = arith.constant 0.000000e+00 : f32
    %331 = vector.broadcast %cst_176 : f32 to vector<8x128xf32>
    %332 = arith.cmpf ogt, %330, %331 : vector<8x128xf32>
    %cst_177 = arith.constant 1.000000e+00 : f32
    %cst_178 = arith.constant 0.000000e+00 : f32
    %333 = vector.broadcast %cst_177 : f32 to vector<8x128xf32>
    %334 = vector.broadcast %cst_178 : f32 to vector<8x128xf32>
    %335 = arith.select %332, %333, %334 : vector<8x128xi1>, vector<8x128xf32>
    %336 = arith.index_cast %326 : i32 to index
    %c0_179 = arith.constant 0 : index
    %337 = vector.load %arg12[%336, %c0_179] : memref<64x128xf32, #tpu.memory_space<vmem>>, vector<8x128xf32>
    tpu.vector_store %arg12[%336, %c0_179], %335 {strides = array<i32>} : memref<64x128xf32, #tpu.memory_space<vmem>>, vector<8x128xf32>,
    %cst_180 = arith.constant 0.818730771 : f32
    %338 = vector.broadcast %cst_180 : f32 to vector<8x128xf32>
    %339 = arith.mulf %338, %318 : vector<8x128xf32>
    %340 = arith.addf %339, %328 : vector<8x128xf32>
    %cst_181 = arith.constant 0.904837429 : f32
    %341 = vector.broadcast %cst_181 : f32 to vector<8x128xf32>
    %342 = arith.mulf %341, %324 : vector<8x128xf32>
    %343 = arith.addf %342, %318 : vector<8x128xf32>
    %cst_182 = arith.constant 1.000000e+00 : f32
    %344 = vector.broadcast %cst_182 : f32 to vector<8x128xf32>
    %345 = arith.subf %344, %335 : vector<8x128xf32>
    %346 = arith.mulf %343, %345 : vector<8x128xf32>
    %c7_i32_183 = arith.constant 7 : i32
    %c8_i32_184 = arith.constant 8 : i32
    %347 = arith.muli %c7_i32_183, %c8_i32_184 : i32
    %348 = tpu.assume_multiple %347, 8 : i32
    %349 = arith.index_cast %348 : i32 to index
    %c0_185 = arith.constant 0 : index
    %350 = vector.load %arg13[%349, %c0_185] : memref<64x128xf32, #tpu.memory_space<vmem>>, vector<8x128xf32>
    %cst_186 = arith.constant 1.000000e+00 : f32
    %351 = vector.broadcast %cst_186 : f32 to vector<8x128xf32>
    %352 = arith.subf %346, %351 : vector<8x128xf32>
    %cst_187 = arith.constant 0.000000e+00 : f32
    %353 = vector.broadcast %cst_187 : f32 to vector<8x128xf32>
    %354 = arith.cmpf ogt, %352, %353 : vector<8x128xf32>
    %cst_188 = arith.constant 1.000000e+00 : f32
    %cst_189 = arith.constant 0.000000e+00 : f32
    %355 = vector.broadcast %cst_188 : f32 to vector<8x128xf32>
    %356 = vector.broadcast %cst_189 : f32 to vector<8x128xf32>
    %357 = arith.select %354, %355, %356 : vector<8x128xi1>, vector<8x128xf32>
    %358 = arith.index_cast %348 : i32 to index
    %c0_190 = arith.constant 0 : index
    %359 = vector.load %arg12[%358, %c0_190] : memref<64x128xf32, #tpu.memory_space<vmem>>, vector<8x128xf32>
    tpu.vector_store %arg12[%358, %c0_190], %357 {strides = array<i32>} : memref<64x128xf32, #tpu.memory_space<vmem>>, vector<8x128xf32>,
    %cst_191 = arith.constant 0.818730771 : f32
    %360 = vector.broadcast %cst_191 : f32 to vector<8x128xf32>
    %361 = arith.mulf %360, %340 : vector<8x128xf32>
    %362 = arith.addf %361, %350 : vector<8x128xf32>
    %cst_192 = arith.constant 0.904837429 : f32
    %363 = vector.broadcast %cst_192 : f32 to vector<8x128xf32>
    %364 = arith.mulf %363, %346 : vector<8x128xf32>
    %365 = arith.addf %364, %340 : vector<8x128xf32>
    %cst_193 = arith.constant 1.000000e+00 : f32
    %366 = vector.broadcast %cst_193 : f32 to vector<8x128xf32>
    %367 = arith.subf %366, %357 : vector<8x128xf32>
    %368 = arith.mulf %365, %367 : vector<8x128xf32>
    %c8_i32_194 = arith.constant 8 : i32
    %c0_195 = arith.constant 0 : index
    %c0_196 = arith.constant 0 : index
    %369 = vector.load %arg8[%c0_195, %c0_196] : memref<8x128xf32, #tpu.memory_space<vmem>>, vector<8x128xf32>
    tpu.vector_store %arg8[%c0_195, %c0_196], %362 {strides = array<i32>} : memref<8x128xf32, #tpu.memory_space<vmem>>, vector<8x128xf32>,
    %c0_197 = arith.constant 0 : index
    %c0_198 = arith.constant 0 : index
    %370 = vector.load %arg9[%c0_197, %c0_198] : memref<8x128xf32, #tpu.memory_space<vmem>>, vector<8x128xf32>
    tpu.vector_store %arg9[%c0_197, %c0_198], %368 {strides = array<i32>} : memref<8x128xf32, #tpu.memory_space<vmem>>, vector<8x128xf32>,
    %c0_199 = arith.constant 0 : index
    %c0_200 = arith.constant 0 : index
    %371 = vector.load %arg4[%c0_199, %c0_200] : memref<128x128xf32, #tpu.memory_space<vmem>>, vector<128x128xf32>
    %c0_201 = arith.constant 0 : index
    %c0_202 = arith.constant 0 : index
    %372 = vector.load %arg12[%c0_201, %c0_202] : memref<64x128xf32, #tpu.memory_space<vmem>>, vector<64x128xf32>
    %cst_203 = arith.constant dense<0.000000e+00> : vector<64x128xf32>
    %373 = tpu.matmul %372, %371, %cst_203 {dimension_numbers = #tpu.dot_dimension_numbers<[1], [0], [0], [1], [0, 0, 1, 1], [], []>} : vector<64x128xf32>, vector<128x128xf32>, vector<64x128xf32> -> vector<64x128xf32>
    %c0_204 = arith.constant 0 : index
    %c0_205 = arith.constant 0 : index
    %374 = vector.load %arg13[%c0_204, %c0_205] : memref<64x128xf32, #tpu.memory_space<vmem>>, vector<64x128xf32>
    tpu.vector_store %arg13[%c0_204, %c0_205], %373 {strides = array<i32>} : memref<64x128xf32, #tpu.memory_space<vmem>>, vector<64x128xf32>,
    %c0_206 = arith.constant 0 : index
    %c0_207 = arith.constant 0 : index
    %375 = vector.load %arg10[%c0_206, %c0_207] : memref<8x128xf32, #tpu.memory_space<vmem>>, vector<8x128xf32>
    %c0_208 = arith.constant 0 : index
    %c0_209 = arith.constant 0 : index
    %376 = vector.load %arg11[%c0_208, %c0_209] : memref<8x128xf32, #tpu.memory_space<vmem>>, vector<8x128xf32>
    %c0_i32_210 = arith.constant 0 : i32
    %c8_i32_211 = arith.constant 8 : i32
    %377 = arith.muli %c0_i32_210, %c8_i32_211 : i32
    %378 = tpu.assume_multiple %377, 8 : i32
    %379 = arith.index_cast %378 : i32 to index
    %c0_212 = arith.constant 0 : index
    %380 = vector.load %arg13[%379, %c0_212] : memref<64x128xf32, #tpu.memory_space<vmem>>, vector<8x128xf32>
    %cst_213 = arith.constant 0.818730771 : f32
    %381 = vector.broadcast %cst_213 : f32 to vector<8x128xf32>
    %382 = arith.mulf %381, %375 : vector<8x128xf32>
    %383 = arith.addf %382, %380 : vector<8x128xf32>
    %cst_214 = arith.constant 0.904837429 : f32
    %384 = vector.broadcast %cst_214 : f32 to vector<8x128xf32>
    %385 = arith.mulf %384, %376 : vector<8x128xf32>
    %386 = arith.addf %385, %375 : vector<8x128xf32>
    %387 = arith.index_cast %378 : i32 to index
    %c0_215 = arith.constant 0 : index
    %388 = vector.load %arg5[%387, %c0_215] : memref<64x128xf32, #tpu.memory_space<vmem>>, vector<8x128xf32>
    tpu.vector_store %arg5[%387, %c0_215], %386 {strides = array<i32>} : memref<64x128xf32, #tpu.memory_space<vmem>>, vector<8x128xf32>,
    %c1_i32_216 = arith.constant 1 : i32
    %c8_i32_217 = arith.constant 8 : i32
    %389 = arith.muli %c1_i32_216, %c8_i32_217 : i32
    %390 = tpu.assume_multiple %389, 8 : i32
    %391 = arith.index_cast %390 : i32 to index
    %c0_218 = arith.constant 0 : index
    %392 = vector.load %arg13[%391, %c0_218] : memref<64x128xf32, #tpu.memory_space<vmem>>, vector<8x128xf32>
    %cst_219 = arith.constant 0.818730771 : f32
    %393 = vector.broadcast %cst_219 : f32 to vector<8x128xf32>
    %394 = arith.mulf %393, %383 : vector<8x128xf32>
    %395 = arith.addf %394, %392 : vector<8x128xf32>
    %cst_220 = arith.constant 0.904837429 : f32
    %396 = vector.broadcast %cst_220 : f32 to vector<8x128xf32>
    %397 = arith.mulf %396, %386 : vector<8x128xf32>
    %398 = arith.addf %397, %383 : vector<8x128xf32>
    %399 = arith.index_cast %390 : i32 to index
    %c0_221 = arith.constant 0 : index
    %400 = vector.load %arg5[%399, %c0_221] : memref<64x128xf32, #tpu.memory_space<vmem>>, vector<8x128xf32>
    tpu.vector_store %arg5[%399, %c0_221], %398 {strides = array<i32>} : memref<64x128xf32, #tpu.memory_space<vmem>>, vector<8x128xf32>,
    %c2_i32_222 = arith.constant 2 : i32
    %c8_i32_223 = arith.constant 8 : i32
    %401 = arith.muli %c2_i32_222, %c8_i32_223 : i32
    %402 = tpu.assume_multiple %401, 8 : i32
    %403 = arith.index_cast %402 : i32 to index
    %c0_224 = arith.constant 0 : index
    %404 = vector.load %arg13[%403, %c0_224] : memref<64x128xf32, #tpu.memory_space<vmem>>, vector<8x128xf32>
    %cst_225 = arith.constant 0.818730771 : f32
    %405 = vector.broadcast %cst_225 : f32 to vector<8x128xf32>
    %406 = arith.mulf %405, %395 : vector<8x128xf32>
    %407 = arith.addf %406, %404 : vector<8x128xf32>
    %cst_226 = arith.constant 0.904837429 : f32
    %408 = vector.broadcast %cst_226 : f32 to vector<8x128xf32>
    %409 = arith.mulf %408, %398 : vector<8x128xf32>
    %410 = arith.addf %409, %395 : vector<8x128xf32>
    %411 = arith.index_cast %402 : i32 to index
    %c0_227 = arith.constant 0 : index
    %412 = vector.load %arg5[%411, %c0_227] : memref<64x128xf32, #tpu.memory_space<vmem>>, vector<8x128xf32>
    tpu.vector_store %arg5[%411, %c0_227], %410 {strides = array<i32>} : memref<64x128xf32, #tpu.memory_space<vmem>>, vector<8x128xf32>,
    %c3_i32_228 = arith.constant 3 : i32
    %c8_i32_229 = arith.constant 8 : i32
    %413 = arith.muli %c3_i32_228, %c8_i32_229 : i32
    %414 = tpu.assume_multiple %413, 8 : i32
    %415 = arith.index_cast %414 : i32 to index
    %c0_230 = arith.constant 0 : index
    %416 = vector.load %arg13[%415, %c0_230] : memref<64x128xf32, #tpu.memory_space<vmem>>, vector<8x128xf32>
    %cst_231 = arith.constant 0.818730771 : f32
    %417 = vector.broadcast %cst_231 : f32 to vector<8x128xf32>
    %418 = arith.mulf %417, %407 : vector<8x128xf32>
    %419 = arith.addf %418, %416 : vector<8x128xf32>
    %cst_232 = arith.constant 0.904837429 : f32
    %420 = vector.broadcast %cst_232 : f32 to vector<8x128xf32>
    %421 = arith.mulf %420, %410 : vector<8x128xf32>
    %422 = arith.addf %421, %407 : vector<8x128xf32>
    %423 = arith.index_cast %414 : i32 to index
    %c0_233 = arith.constant 0 : index
    %424 = vector.load %arg5[%423, %c0_233] : memref<64x128xf32, #tpu.memory_space<vmem>>, vector<8x128xf32>
    tpu.vector_store %arg5[%423, %c0_233], %422 {strides = array<i32>} : memref<64x128xf32, #tpu.memory_space<vmem>>, vector<8x128xf32>,
    %c4_i32_234 = arith.constant 4 : i32
    %c8_i32_235 = arith.constant 8 : i32
    %425 = arith.muli %c4_i32_234, %c8_i32_235 : i32
    %426 = tpu.assume_multiple %425, 8 : i32
    %427 = arith.index_cast %426 : i32 to index
    %c0_236 = arith.constant 0 : index
    %428 = vector.load %arg13[%427, %c0_236] : memref<64x128xf32, #tpu.memory_space<vmem>>, vector<8x128xf32>
    %cst_237 = arith.constant 0.818730771 : f32
    %429 = vector.broadcast %cst_237 : f32 to vector<8x128xf32>
    %430 = arith.mulf %429, %419 : vector<8x128xf32>
    %431 = arith.addf %430, %428 : vector<8x128xf32>
    %cst_238 = arith.constant 0.904837429 : f32
    %432 = vector.broadcast %cst_238 : f32 to vector<8x128xf32>
    %433 = arith.mulf %432, %422 : vector<8x128xf32>
    %434 = arith.addf %433, %419 : vector<8x128xf32>
    %435 = arith.index_cast %426 : i32 to index
    %c0_239 = arith.constant 0 : index
    %436 = vector.load %arg5[%435, %c0_239] : memref<64x128xf32, #tpu.memory_space<vmem>>, vector<8x128xf32>
    tpu.vector_store %arg5[%435, %c0_239], %434 {strides = array<i32>} : memref<64x128xf32, #tpu.memory_space<vmem>>, vector<8x128xf32>,
    %c5_i32_240 = arith.constant 5 : i32
    %c8_i32_241 = arith.constant 8 : i32
    %437 = arith.muli %c5_i32_240, %c8_i32_241 : i32
    %438 = tpu.assume_multiple %437, 8 : i32
    %439 = arith.index_cast %438 : i32 to index
    %c0_242 = arith.constant 0 : index
    %440 = vector.load %arg13[%439, %c0_242] : memref<64x128xf32, #tpu.memory_space<vmem>>, vector<8x128xf32>
    %cst_243 = arith.constant 0.818730771 : f32
    %441 = vector.broadcast %cst_243 : f32 to vector<8x128xf32>
    %442 = arith.mulf %441, %431 : vector<8x128xf32>
    %443 = arith.addf %442, %440 : vector<8x128xf32>
    %cst_244 = arith.constant 0.904837429 : f32
    %444 = vector.broadcast %cst_244 : f32 to vector<8x128xf32>
    %445 = arith.mulf %444, %434 : vector<8x128xf32>
    %446 = arith.addf %445, %431 : vector<8x128xf32>
    %447 = arith.index_cast %438 : i32 to index
    %c0_245 = arith.constant 0 : index
    %448 = vector.load %arg5[%447, %c0_245] : memref<64x128xf32, #tpu.memory_space<vmem>>, vector<8x128xf32>
    tpu.vector_store %arg5[%447, %c0_245], %446 {strides = array<i32>} : memref<64x128xf32, #tpu.memory_space<vmem>>, vector<8x128xf32>,
    %c6_i32_246 = arith.constant 6 : i32
    %c8_i32_247 = arith.constant 8 : i32
    %449 = arith.muli %c6_i32_246, %c8_i32_247 : i32
    %450 = tpu.assume_multiple %449, 8 : i32
    %451 = arith.index_cast %450 : i32 to index
    %c0_248 = arith.constant 0 : index
    %452 = vector.load %arg13[%451, %c0_248] : memref<64x128xf32, #tpu.memory_space<vmem>>, vector<8x128xf32>
    %cst_249 = arith.constant 0.818730771 : f32
    %453 = vector.broadcast %cst_249 : f32 to vector<8x128xf32>
    %454 = arith.mulf %453, %443 : vector<8x128xf32>
    %455 = arith.addf %454, %452 : vector<8x128xf32>
    %cst_250 = arith.constant 0.904837429 : f32
    %456 = vector.broadcast %cst_250 : f32 to vector<8x128xf32>
    %457 = arith.mulf %456, %446 : vector<8x128xf32>
    %458 = arith.addf %457, %443 : vector<8x128xf32>
    %459 = arith.index_cast %450 : i32 to index
    %c0_251 = arith.constant 0 : index
    %460 = vector.load %arg5[%459, %c0_251] : memref<64x128xf32, #tpu.memory_space<vmem>>, vector<8x128xf32>
    tpu.vector_store %arg5[%459, %c0_251], %458 {strides = array<i32>} : memref<64x128xf32, #tpu.memory_space<vmem>>, vector<8x128xf32>,
    %c7_i32_252 = arith.constant 7 : i32
    %c8_i32_253 = arith.constant 8 : i32
    %461 = arith.muli %c7_i32_252, %c8_i32_253 : i32
    %462 = tpu.assume_multiple %461, 8 : i32
    %463 = arith.index_cast %462 : i32 to index
    %c0_254 = arith.constant 0 : index
    %464 = vector.load %arg13[%463, %c0_254] : memref<64x128xf32, #tpu.memory_space<vmem>>, vector<8x128xf32>
    %cst_255 = arith.constant 0.818730771 : f32
    %465 = vector.broadcast %cst_255 : f32 to vector<8x128xf32>
    %466 = arith.mulf %465, %455 : vector<8x128xf32>
    %467 = arith.addf %466, %464 : vector<8x128xf32>
    %cst_256 = arith.constant 0.904837429 : f32
    %468 = vector.broadcast %cst_256 : f32 to vector<8x128xf32>
    %469 = arith.mulf %468, %458 : vector<8x128xf32>
    %470 = arith.addf %469, %455 : vector<8x128xf32>
    %471 = arith.index_cast %462 : i32 to index
    %c0_257 = arith.constant 0 : index
    %472 = vector.load %arg5[%471, %c0_257] : memref<64x128xf32, #tpu.memory_space<vmem>>, vector<8x128xf32>
    tpu.vector_store %arg5[%471, %c0_257], %470 {strides = array<i32>} : memref<64x128xf32, #tpu.memory_space<vmem>>, vector<8x128xf32>,
    %c8_i32_258 = arith.constant 8 : i32
    %c0_259 = arith.constant 0 : index
    %c0_260 = arith.constant 0 : index
    %473 = vector.load %arg10[%c0_259, %c0_260] : memref<8x128xf32, #tpu.memory_space<vmem>>, vector<8x128xf32>
    tpu.vector_store %arg10[%c0_259, %c0_260], %467 {strides = array<i32>} : memref<8x128xf32, #tpu.memory_space<vmem>>, vector<8x128xf32>,
    %c0_261 = arith.constant 0 : index
    %c0_262 = arith.constant 0 : index
    %474 = vector.load %arg11[%c0_261, %c0_262] : memref<8x128xf32, #tpu.memory_space<vmem>>, vector<8x128xf32>
    tpu.vector_store %arg11[%c0_261, %c0_262], %470 {strides = array<i32>} : memref<8x128xf32, #tpu.memory_space<vmem>>, vector<8x128xf32>,
    return
  }
  func.func @transform_0(%arg0: i32) -> (i32, i32) {
    %c0_i32 = arith.constant 0 : i32
    %c0_i32_0 = arith.constant 0 : i32
    return %arg0, %c0_i32 : i32, i32
  }
  func.func @transform_1(%arg0: i32) -> (i32, i32) {
    %c0_i32 = arith.constant 0 : i32
    %c0_i32_0 = arith.constant 0 : i32
    %c0_i32_1 = arith.constant 0 : i32
    return %c0_i32, %c0_i32_0 : i32, i32
  }
  func.func @transform_2(%arg0: i32) -> (i32, i32) {
    %c0_i32 = arith.constant 0 : i32
    %c0_i32_0 = arith.constant 0 : i32
    %c0_i32_1 = arith.constant 0 : i32
    return %c0_i32, %c0_i32_0 : i32, i32
  }
  func.func @transform_3(%arg0: i32) -> (i32, i32) {
    %c0_i32 = arith.constant 0 : i32
    %c0_i32_0 = arith.constant 0 : i32
    %c0_i32_1 = arith.constant 0 : i32
    return %c0_i32, %c0_i32_0 : i32, i32
  }
  func.func @transform_4(%arg0: i32) -> (i32, i32) {
    %c0_i32 = arith.constant 0 : i32
    %c0_i32_0 = arith.constant 0 : i32
    return %arg0, %c0_i32 : i32, i32
  }
}

</mosaic_0001>

<bundles_post_ra>
// kernel: tpu_custom_call.1
= control target key start
LH: loop header
LB: loop body
LE: loop exit
PB: predicated region body
PF: predicated region fallthrough
CT: control target
= control target key end

     0   :  { %9 = vsyncpa [#allocation11], 0  ;;  %s1393_s0 = inlined_call_operand.hbm [shape: f32[64,128], index: 0, kind: input, shape index: {}]   ;;  %s1394_s1 = inlined_call_operand.hbm [shape: f32[128,128], index: 1, kind: input, shape index: {}]   ;;  %s1395_s2 = inlined_call_operand.hbm [shape: f32[128,128], index: 2, kind: input, shape index: {}]   ;;  %s1396_s3 = inlined_call_operand.hbm [shape: f32[128,128], index: 3, kind: input, shape index: {}]   ;;  %s1397_s4 = inlined_call_operand.hbm [shape: f32[64,128], index: 4, kind: output, shape index: {}]  }
   0x1   :  { %10 = vsyncpa [#allocation14], 0 }
   0x2   :  { %11 = vsyncpa [#allocation17], 0 }
   0x3   :  { %12 = vsyncpa [#allocation12], 0  ;;  %s1241_s15 = smov [#allocation13]   ;;  %s1242_s17 = smov [#allocation10]  }
   0x4   :  { %s30_s16 = sshll.u32 %s1241_s15, 4  ;;  %s18_s18 = sshll.u32 %s1242_s17, 4  ;;  %s31_s16 = int_to_ptr.vmem [resolvable:$true] %s30_s16  ;;  %s1275_s18 = int_to_ptr.vmem [resolvable:$true] %s18_s18 }
   0x5   :  { %s1123_s21 = scalar_lea.hbm %s1394_s1, 2048 }
   0x6   :  { %p1124_p0 = scmp.ne.s32.totalorder %s1394_s1, %s1123_s21  ;;  %p1127_p1 = scmp.lt.u32.totalorder %s1123_s21, %s1394_s1 }
   0x8   :  { %p1129_p2 = pnand %p1127_p1, %p1124_p0 }
   0xa   :  { %1132 = shalt.err (!%p1129_p2)
}
   0xb   :  { %s1133_s26 = scalar_lea.vmem %s31_s16, 2048  ;;  %p1138_p4 = scmp.lt.s32.totalorder %s31_s16, %s31_s16 }
   0xc   :  { %p1134_p3 = scmp.ne.s32.totalorder %s31_s16, %s1133_s26  ;;  %p1139_p5 = scmp.lt.s32.totalorder %s1133_s26, %s1133_s26 }
   0xe   :  { %p1140_p6 = por %p1139_p5, %p1138_p4 }
  0x10   :  { %p1141_p7 = pnand %p1140_p6, %p1134_p3 }
  0x12   :  { %1144 = shalt.err (!%p1141_p7)
}
  0x13   :  { %s1243_s27 = smov 128   ;;  %s1244_s28 = smov 8  }
  0x14   :  { %36 = dma.hbm_to_vmem [thread:$0]  %s1394_s1, 2048, %s31_s16, [#allocation14], %s1243_s27, %s1243_s27, %s1244_s28  }
  0x15   :  { %s1145_s7 = scalar_lea.hbm %s1393_s0, 1024 }
  0x16   :  { %p1146_p8 = scmp.ne.s32.totalorder %s1393_s0, %s1145_s7  ;;  %p1149_p9 = scmp.lt.u32.totalorder %s1145_s7, %s1393_s0 }
  0x18   :  { %p1151_p10 = pnand %p1149_p9, %p1146_p8 }
  0x1a   :  { %1154 = shalt.err (!%p1151_p10)
}
  0x1b   :  { %s1155_s12 = scalar_lea.vmem %s1275_s18, 1024  ;;  %p1160_p12 = scmp.lt.s32.totalorder %s1275_s18, %s1275_s18 }
  0x1c   :  { %p1156_p11 = scmp.ne.s32.totalorder %s1275_s18, %s1155_s12  ;;  %p1161_p13 = scmp.lt.s32.totalorder %s1155_s12, %s1155_s12 }
  0x1e   :  { %p1162_p0 = por %p1161_p13, %p1160_p12 }
  0x20   :  { %p1163_p1 = pnand %p1162_p0, %p1156_p11 }
  0x22   :  { %1166 = shalt.err (!%p1163_p1)
}
  0x23   :  { %24 = dma.hbm_to_vmem [thread:$0]  %s1393_s0, 1024, %s1275_s18, [#allocation11], %s1243_s27, %s1243_s27, %s1244_s28  }
  0x24   :  { %s1245_s14 = smov [#allocation15]   ;;  %s1246_s16 = smov [#allocation16]  }
  0x25   :  { %s42_s15 = sshll.u32 %s1245_s14, 4  ;;  %s54_s17 = sshll.u32 %s1246_s16, 4  ;;  %s43_s15 = int_to_ptr.vmem [resolvable:$true] %s42_s15  ;;  %s1312_s17 = int_to_ptr.vmem [resolvable:$true] %s54_s17 }
  0x26   :  { %s1167_s21 = scalar_lea.hbm %s1395_s2, 2048 }
  0x27   :  { %p1168_p2 = scmp.ne.s32.totalorder %s1395_s2, %s1167_s21  ;;  %p1171_p3 = scmp.lt.u32.totalorder %s1167_s21, %s1395_s2 }
  0x29   :  { %p1173_p4 = pnand %p1171_p3, %p1168_p2 }
  0x2b   :  { %1176 = shalt.err (!%p1173_p4)
}
  0x2c   :  { %s1177_s0 = scalar_lea.vmem %s43_s15, 2048  ;;  %p1182_p6 = scmp.lt.s32.totalorder %s43_s15, %s43_s15 }
  0x2d   :  { %p1178_p5 = scmp.ne.s32.totalorder %s43_s15, %s1177_s0  ;;  %p1183_p7 = scmp.lt.s32.totalorder %s1177_s0, %s1177_s0 }
  0x2f   :  { %p1184_p8 = por %p1183_p7, %p1182_p6 }
  0x31   :  { %p1185_p9 = pnand %p1184_p8, %p1178_p5 }
  0x33   :  { %1188 = shalt.err (!%p1185_p9)
}
  0x34   :  { %48 = dma.hbm_to_vmem [thread:$0]  %s1395_s2, 2048, %s43_s15, [#allocation14], %s1243_s27, %s1243_s27, %s1244_s28  }
  0x35   :  { %s1189_s5 = scalar_lea.hbm %s1396_s3, 2048 }
  0x36   :  { %p1190_p10 = scmp.ne.s32.totalorder %s1396_s3, %s1189_s5  ;;  %p1193_p11 = scmp.lt.u32.totalorder %s1189_s5, %s1396_s3 }
  0x38   :  { %p1195_p12 = pnand %p1193_p11, %p1190_p10 }
  0x3a   :  { %1198 = shalt.err (!%p1195_p12)
}
  0x3b   :  { %s1199_s10 = scalar_lea.vmem %s1312_s17, 2048  ;;  %p1204_p0 = scmp.lt.s32.totalorder %s1312_s17, %s1312_s17 }
  0x3c   :  { %p1200_p13 = scmp.ne.s32.totalorder %s1312_s17, %s1199_s10  ;;  %p1205_p1 = scmp.lt.s32.totalorder %s1199_s10, %s1199_s10 }
  0x3e   :  { %p1206_p2 = por %p1205_p1, %p1204_p0 }
  0x40   :  { %p1207_p3 = pnand %p1206_p2, %p1200_p13 }
  0x42   :  { %1210 = shalt.err (!%p1207_p3)
}
  0x43   :  { %60 = dma.hbm_to_vmem [thread:$0]  %s1396_s3, 2048, %s1312_s17, [#allocation17], %s1243_s27, %s1243_s27, %s1244_s28  }
  0x44   :  { %1233 = dma.done.wait [#allocation11], 1024  }
  0x45   :  { %1234 = vsyncadd [#allocation11], 4294966272 }
  0x46   :  { %1235 = dma.done.wait [#allocation14], 4096  }
  0x47   :  { %1236 = vsyncadd [#allocation14], 4294963200 }
  0x48   :  { %1237 = dma.done.wait [#allocation17], 2048  }
  0x49   :  { %1238 = vsyncadd [#allocation17], 4294965248  ;;  %v1247_v0 = vmov 0.0   ;;  %v83_v1 = vld [vmem:[#allocation13] sm:$0xff]  ;;  %v84_v2 = vld [vmem:[#allocation13 + $0x8] sm:$0xff]  ;;  %s1249_s3 = smov [#allocation18]  }
  0x4a   :  { %946 = vmatprep.mubr.f32.mxu1 %v1247_v0  ;;  %699 = vst [vmem:[#allocation18] sm:$0xff] %v1247_v0  ;;  %v85_v3 = vld [vmem:[#allocation13 + $0x10] sm:$0xff]  ;;  %v1002_v4 = vpack.c.bf16 %v84_v2, %v83_v1  ;;  %v86_v5 = vld [vmem:[#allocation13 + $0x18] sm:$0xff]  ;;  %v87_v7 = vld [vmem:[#allocation13 + $0x20] sm:$0xff]  ;;  %s756_s12 = sshll.u32 %s1249_s3, 4  ;;  %s757_s12 = int_to_ptr.vmem [resolvable:$true] %s756_s12 }
  0x4b   :  { %v1006_v6 = vpack.c.bf16 %v86_v5, %v85_v3  ;;  %v88_v8 = vld [vmem:[#allocation13 + $0x28] sm:$0xff]  ;;  %v99_v10 = vld [vmem:[#allocation10] sm:$0xff]  ;;  %v89_v11 = vld [vmem:[#allocation13 + $0x30] sm:$0xff]  ;;  %s1211_s1 = scalar_lea.vmem %s757_s12, 1024  ;;  %p1216_p5 = scmp.lt.s32.totalorder %s757_s12, %s757_s12 }
  0x4c   :  { %1003 = vmatprep.subr.bf16.mxu0 %v1002_v4  ;;  %v1010_v9 = vpack.c.bf16 %v88_v8, %v87_v7  ;;  %v90_v12 = vld [vmem:[#allocation13 + $0x38] sm:$0xff]  ;;  %902 = vmatprep.mubr.f32.mxu0 %v99_v10  ;;  %v326_v13 = vld [vmem:[#allocation15] sm:$0xff]  ;;  %v327_v14 = vld [vmem:[#allocation15 + $0x8] sm:$0xff]  ;;  %p1212_p4 = scmp.ne.s32.totalorder %s757_s12, %s1211_s1  ;;  %p1217_p6 = scmp.lt.s32.totalorder %s1211_s1, %s1211_s1 }
  0x4d   :  { %1005 = vmatpush3.bf16.msra.mxu0 %v1002_v4  ;;  %v1034_v15 = vpack.c.bf16 %v327_v14, %v326_v13  ;;  %v328_v16 = vld [vmem:[#allocation15 + $0x10] sm:$0xff]  ;;  %v329_v17 = vld [vmem:[#allocation15 + $0x18] sm:$0xff]  ;;  %v1014_v18 = vpack.c.bf16 %v90_v12, %v89_v11  ;;  %v330_v20 = vld [vmem:[#allocation15 + $0x20] sm:$0xff] }
  0x4e   :  { %1007 = vmatprep.subr.bf16.mxu0 %v1006_v6  ;;  %v1038_v19 = vpack.c.bf16 %v329_v17, %v328_v16  ;;  %v331_v21 = vld [vmem:[#allocation15 + $0x28] sm:$0xff]  ;;  %v91_v22 = vld [vmem:[#allocation13 + $0x40] sm:$0xff]  ;;  %v332_v26 = vld [vmem:[#allocation15 + $0x30] sm:$0xff]  ;;  %p1218_p7 = por %p1217_p6, %p1216_p5 }
  0x4f   :  { %v92_v23 = vld [vmem:[#allocation13 + $0x48] sm:$0xff]  ;;  %1035 = vmatprep.subr.bf16.mxu1 %v1034_v15  ;;  %v1042_v24 = vpack.c.bf16 %v331_v21, %v330_v20  ;;  %v333_v27 = vld [vmem:[#allocation15 + $0x38] sm:$0xff]  ;;  %v93_v28 = vld [vmem:[#allocation13 + $0x50] sm:$0xff] }
  0x50   :  { %1037 = vmatpush3.bf16.msra.mxu1 %v1034_v15  ;;  %v1018_v25 = vpack.c.bf16 %v92_v23, %v91_v22  ;;  %v94_v29 = vld [vmem:[#allocation13 + $0x58] sm:$0xff]  ;;  %v1046_v30 = vpack.c.bf16 %v333_v27, %v332_v26  ;;  %v334_v32 = vld [vmem:[#allocation15 + $0x40] sm:$0xff]  ;;  %v335_v33 = vld [vmem:[#allocation15 + $0x48] sm:$0xff]  ;;  %v1248_v26 = vmov 1.0   ;;  %p1219_p8 = pnand %p1218_p7, %p1212_p4 }
  0x51   :  { %1009 = vmatpush3.bf16.msra.mxu0 %v1006_v6  ;;  %1039 = vmatprep.subr.bf16.mxu1 %v1038_v19  ;;  %v1022_v31 = vpack.c.bf16 %v94_v29, %v93_v28  ;;  %v95_v34 = vld [vmem:[#allocation13 + $0x60] sm:$0xff]  ;;  %v96_v35 = vld [vmem:[#allocation13 + $0x68] sm:$0xff]  ;;  %v1050_v36 = vpack.c.bf16 %v335_v33, %v334_v32  ;;  %v336_v38 = vld [vmem:[#allocation15 + $0x50] sm:$0xff] }
  0x52   :  { %1011 = vmatprep.subr.bf16.mxu0 %v1010_v9  ;;  %v1026_v37 = vpack.c.bf16 %v96_v35, %v95_v34  ;;  %v337_v39 = vld [vmem:[#allocation15 + $0x58] sm:$0xff]  ;;  %v97_v40 = vld [vmem:[#allocation13 + $0x70] sm:$0xff]  ;;  %v338_v44 = vld [vmem:[#allocation15 + $0x60] sm:$0xff] }
  0x53   :  { %v98_v41 = vld [vmem:[#allocation13 + $0x78] sm:$0xff]  ;;  %v1054_v42 = vpack.c.bf16 %v337_v39, %v336_v38  ;;  %v339_v45 = vld [vmem:[#allocation15 + $0x68] sm:$0xff]  ;;  %v340_v47 = vld [vmem:[#allocation15 + $0x70] sm:$0xff] }
  0x54   :  { %1041 = vmatpush3.bf16.msra.mxu1 %v1038_v19  ;;  %v1030_v43 = vpack.c.bf16 %v98_v41, %v97_v40  ;;  %v1058_v46 = vpack.c.bf16 %v339_v45, %v338_v44  ;;  %v341_v48 = vld [vmem:[#allocation15 + $0x78] sm:$0xff]  ;;  %v100_v49 = vld [vmem:[#allocation10 + $0x8] sm:$0xff]  ;;  %v101_v51 = vld [vmem:[#allocation10 + $0x10] sm:$0xff] }
  0x55   :  { %1013 = vmatpush3.bf16.msra.mxu0 %v1010_v9  ;;  %1043 = vmatprep.subr.bf16.mxu1 %v1042_v24  ;;  %v1062_v50 = vpack.c.bf16 %v341_v48, %v340_v47  ;;  %v102_v52 = vld [vmem:[#allocation10 + $0x18] sm:$0xff]  ;;  %v103_v53 = vld [vmem:[#allocation10 + $0x20] sm:$0xff]  ;;  %v104_v54 = vld [vmem:[#allocation10 + $0x28] sm:$0xff] }
  0x56   :  { %1015 = vmatprep.subr.bf16.mxu0 %v1014_v18  ;;  %v555_v55 = vld [vmem:[#allocation16] sm:$0xff]  ;;  %v556_v56 = vld [vmem:[#allocation16 + $0x8] sm:$0xff]  ;;  %v557_v57 = vld [vmem:[#allocation16 + $0x10] sm:$0xff] }
  0x57   :  { %v1066_v58 = vpack.c.bf16 %v556_v56, %v555_v55  ;;  %v558_v59 = vld [vmem:[#allocation16 + $0x18] sm:$0xff]  ;;  %v559_v61 = vld [vmem:[#allocation16 + $0x20] sm:$0xff]  ;;  %v560_v62 = vld [vmem:[#allocation16 + $0x28] sm:$0xff] }
  0x58   :  { %1045 = vmatpush3.bf16.msra.mxu1 %v1042_v24  ;;  %v1070_v60 = vpack.c.bf16 %v558_v59, %v557_v57  ;;  %v105_v63 = vld [vmem:[#allocation10 + $0x30] sm:$0xff]  ;;  %v1074_v1 = vpack.c.bf16 %v560_v62, %v559_v61  ;;  %v106_v2 = vld [vmem:[#allocation10 + $0x38] sm:$0xff]  ;;  %v563_v6 = vld [vmem:[#allocation16 + $0x40] sm:$0xff] }
  0x59   :  { %1017 = vmatpush3.bf16.msra.mxu0 %v1014_v18  ;;  %1047 = vmatprep.subr.bf16.mxu1 %v1046_v30  ;;  %v561_v3 = vld [vmem:[#allocation16 + $0x30] sm:$0xff]  ;;  %v562_v4 = vld [vmem:[#allocation16 + $0x38] sm:$0xff]  ;;  %v564_v7 = vld [vmem:[#allocation16 + $0x48] sm:$0xff] }
  0x5a   :  { %1019 = vmatprep.subr.bf16.mxu0 %v1018_v25  ;;  %v1078_v5 = vpack.c.bf16 %v562_v4, %v561_v3  ;;  %v1082_v8 = vpack.c.bf16 %v564_v7, %v563_v6  ;;  %v565_v9 = vld [vmem:[#allocation16 + $0x50] sm:$0xff]  ;;  %v566_v10 = vld [vmem:[#allocation16 + $0x58] sm:$0xff]  ;;  %v567_v12 = vld [vmem:[#allocation16 + $0x60] sm:$0xff] }
  0x5b   :  { %v1086_v11 = vpack.c.bf16 %v566_v10, %v565_v9  ;;  %v568_v13 = vld [vmem:[#allocation16 + $0x68] sm:$0xff]  ;;  %v569_v15 = vld [vmem:[#allocation16 + $0x70] sm:$0xff]  ;;  %v570_v16 = vld [vmem:[#allocation16 + $0x78] sm:$0xff] }
  0x5c   :  { %1049 = vmatpush3.bf16.msra.mxu1 %v1046_v30  ;;  %v1090_v14 = vpack.c.bf16 %v568_v13, %v567_v12  ;;  %v1094_v17 = vpack.c.bf16 %v570_v16, %v569_v15 }
  0x5d   :  { %1021 = vmatpush3.bf16.msra.mxu0 %v1018_v25  ;;  %1051 = vmatprep.subr.bf16.mxu1 %v1050_v36 }
  0x5e   :  { %1023 = vmatprep.subr.bf16.mxu0 %v1022_v31 }
  0x60   :  { %1053 = vmatpush3.bf16.msra.mxu1 %v1050_v36 }
  0x61   :  { %1025 = vmatpush3.bf16.msra.mxu0 %v1022_v31  ;;  %1055 = vmatprep.subr.bf16.mxu1 %v1054_v42 }
  0x62   :  { %1027 = vmatprep.subr.bf16.mxu0 %v1026_v37 }
  0x64   :  { %1057 = vmatpush3.bf16.msra.mxu1 %v1054_v42 }
  0x65   :  { %1029 = vmatpush3.bf16.msra.mxu0 %v1026_v37  ;;  %1059 = vmatprep.subr.bf16.mxu1 %v1058_v46 }
  0x66   :  { %1031 = vmatprep.subr.bf16.mxu0 %v1030_v43 }
  0x68   :  { %1061 = vmatpush3.bf16.msra.mxu1 %v1058_v46 }
  0x69   :  { %1033 = vmatpush3.bf16.msra.mxu0 %v1030_v43  ;;  %1063 = vmatprep.subr.bf16.mxu1 %v1062_v50 }
  0x6a   :  { %1067 = vmatprep.subr.bf16.mxu0 %v1066_v58 }
  0x6c   :  { %903 = vmatmul.mubr.f32.vlgmr.msra.gmra.mrb[0].mxu0 %v100_v49  ;;  %1065 = vmatpush3.bf16.msra.mxu1 %v1062_v50 }
  0x6d   :  { %905 = vmatprep.mubr.f32.mxu0 %v101_v51  ;;  %1098 = vmatprep.subr.bf16.mxu1 %v1066_v58 }
  0x6e   :  { %1069 = vmatpush3.bf16.msra.mxu0 %v1066_v58 }
  0x6f   :  { %947 = vmatmul.mubr.f32.vlgmr.msra.gmra.mrb[0].mxu1 %v1247_v0  ;;  %1071 = vmatprep.subr.bf16.mxu0 %v1070_v60 }
  0x70   :  { %906 = vmatmul.mubr.f32.gmra.mrb[2].mxu0 %v102_v52  ;;  %1106 = vmatpush3.bf16.msra.mxu1 %v1066_v58 }
  0x71   :  { %908 = vmatprep.mubr.f32.mxu0 %v103_v53  ;;  %1099 = vmatprep.subr.bf16.mxu1 %v1070_v60 }
  0x72   :  { %1073 = vmatpush3.bf16.msra.mxu0 %v1070_v60 }
  0x73   :  { %1075 = vmatprep.subr.bf16.mxu0 %v1074_v1 }
  0x74   :  { %909 = vmatmul.mubr.f32.gmra.mrb[4].mxu0 %v104_v54  ;;  %1107 = vmatpush3.bf16.msra.mxu1 %v1070_v60 }
  0x75   :  { %911 = vmatprep.mubr.f32.mxu0 %v105_v63  ;;  %1100 = vmatprep.subr.bf16.mxu1 %v1074_v1 }
  0x76   :  { %1077 = vmatpush3.bf16.msra.mxu0 %v1074_v1 }
  0x77   :  { %1079 = vmatprep.subr.bf16.mxu0 %v1078_v5 }
  0x78   :  { %912 = vmatmul.mubr.f32.gmra.mrb[6].mxu0 %v106_v2  ;;  %1108 = vmatpush3.bf16.msra.mxu1 %v1074_v1 }
  0x79   :  { %990 = vmatprep.mubr.f32.mxu0 %v1247_v0  ;;  %1101 = vmatprep.subr.bf16.mxu1 %v1078_v5 }
  0x7a   :  { %1081 = vmatpush3.bf16.msra.mxu0 %v1078_v5 }
  0x7b   :  { %1083 = vmatprep.subr.bf16.mxu0 %v1082_v8 }
  0x7c   :  { %1109 = vmatpush3.bf16.msra.mxu1 %v1078_v5 }
  0x7d   :  { %1102 = vmatprep.subr.bf16.mxu1 %v1082_v8 }
  0x7e   :  { %1085 = vmatpush3.bf16.msra.mxu0 %v1082_v8 }
  0x7f   :  { %1087 = vmatprep.subr.bf16.mxu0 %v1086_v11 }
  0x80   :  { %1110 = vmatpush3.bf16.msra.mxu1 %v1082_v8 }
  0x81   :  { %1103 = vmatprep.subr.bf16.mxu1 %v1086_v11 }
  0x82   :  { %1089 = vmatpush3.bf16.msra.mxu0 %v1086_v11 }
  0x83   :  { %1091 = vmatprep.subr.bf16.mxu0 %v1090_v14 }
  0x84   :  { %1111 = vmatpush3.bf16.msra.mxu1 %v1086_v11 }
  0x85   :  { %1104 = vmatprep.subr.bf16.mxu1 %v1090_v14 }
  0x86   :  { %1093 = vmatpush3.bf16.msra.mxu0 %v1090_v14 }
  0x87   :  { %1095 = vmatprep.subr.bf16.mxu0 %v1094_v17 }
  0x88   :  { %1112 = vmatpush3.bf16.msra.mxu1 %v1090_v14 }
  0x89   :  { %1105 = vmatprep.subr.bf16.mxu1 %v1094_v17 }
  0x8a   :  { %1097 = vmatpush3.bf16.msra.mxu0 %v1094_v17 }
  0x8c   :  { %1113 = vmatpush3.bf16.msra.mxu1 %v1094_v17 }
  0x8d   :  { %991 = vmatmul.mubr.f32.vlgmr.msra.gmra.mrb[8].mxu0 %v1247_v0 }
 0x13f   :  { %v904_v18 = vpop.f32.mrb[0].mxu0 }
 0x140   :  { %v173_v19 = vpop.f32.mrb[1].mxu0 }
 0x141   :  { %v240_v20 = vmul.f32 0.8187308, %v173_v19  ;;  %v772_v21 = vadd.f32 -1.0, %v173_v19  ;;  %v255_v23 = vmul.f32 0.9048374, %v173_v19 }
 0x142   :  { %v948_v31 = vpop.f32.mrb[0].mxu1 }
 0x143   :  { %v241_v22 = vadd.f32 %v904_v18, %v240_v20  ;;  %vm249_vm0 = vcmp.gt.f32.partialorder %v772_v21, 0.0  ;;  %v907_v24 = vpop.f32.mrb[2].mxu0  ;;  %v416_v35 = vpop.f32.mrb[1].mxu1 }
 0x144   :  { %v250_v25 = vsel %vm249_vm0, 1.0, %v1247_v0  ;;  %949 = vmatprep.mubr.msk.f32.mxu1 %vm249_vm0, %v1248_v26  ;;  %v183_v27 = vpop.f32.mrb[3].mxu0  ;;  %v481_v37 = vmul.f32 0.8187308, %v416_v35  ;;  %v780_v38 = vadd.f32 -1.0, %v416_v35 }
 0x145   :  { %v256_v28 = vadd.f32 %v255_v23, %v241_v22  ;;  %v257_v29 = vsub.f32 1.0, %v250_v25  ;;  %v253_v30 = vmul.f32 0.8187308, %v241_v22  ;;  %v494_v39 = vmul.f32 0.9048374, %v416_v35 }
 0x146   :  { %v482_v43 = vadd.f32 %v948_v31, %v481_v37  ;;  %vm489_vm1 = vcmp.gt.f32.partialorder %v780_v38, 0.0 }
 0x147   :  { %v258_v32 = vmul.f32 %v257_v29, %v256_v28  ;;  %v254_v33 = vadd.f32 %v253_v30, %v183_v27  ;;  %v910_v34 = vpop.f32.mrb[4].mxu0  ;;  %v490_v46 = vsel %vm489_vm1, 1.0, %v1247_v0  ;;  %993 = vmatprep.mubr.msk.f32.mxu0 %vm489_vm1, %v1248_v26 }
 0x148   :  { %v193_v36 = vpop.f32.mrb[5].mxu0  ;;  %v495_v48 = vadd.f32 %v494_v39, %v482_v43  ;;  %v496_v49 = vsub.f32 1.0, %v490_v46  ;;  %v492_v23 = vmul.f32 0.8187308, %v482_v43 }
 0x149   :  { %v773_v40 = vadd.f32 -1.0, %v258_v32  ;;  %v266_v41 = vmul.f32 0.8187308, %v254_v33  ;;  %v268_v42 = vmul.f32 0.9048374, %v258_v32 }
 0x14a   :  { %v497_v52 = vmul.f32 %v496_v49, %v495_v48 }
 0x14b   :  { %vm262_vm2 = vcmp.gt.f32.partialorder %v773_v40, 0.0  ;;  %v269_v44 = vadd.f32 %v268_v42, %v254_v33  ;;  %v267_v45 = vadd.f32 %v907_v24, %v266_v41  ;;  %v913_v14 = vpop.f32.mrb[6].mxu0 }
 0x14c   :  { %v263_v47 = vsel %vm262_vm2, 1.0, %v1247_v0  ;;  %950 = vmatmul.mubr.msk.f32.gmra.mrb[2].mxu1 %vm262_vm2, %v1248_v26  ;;  %v781_v55 = vadd.f32 -1.0, %v497_v52  ;;  %v203_v15 = vpop.f32.mrb[7].mxu0  ;;  %v505_v28 = vmul.f32 0.9048374, %v497_v52 }
 0x14d   :  { %v270_v50 = vsub.f32 1.0, %v263_v47  ;;  %v279_v51 = vmul.f32 0.8187308, %v267_v45 }
 0x14e   :  { %vm500_vm3 = vcmp.gt.f32.partialorder %v781_v55, 0.0 }
 0x14f   :  { %v271_v53 = vmul.f32 %v270_v50, %v269_v44  ;;  %v280_v54 = vadd.f32 %v279_v51, %v193_v36  ;;  %994 = vmatmul.mubr.msk.f32.gmra.mrb[10].mxu0 %vm500_vm3, %v1248_v26  ;;  %v501_v24 = vsel %vm500_vm3, 1.0, %v1247_v0 }
 0x150   :  { %v507_v29 = vsub.f32 1.0, %v501_v24 }
 0x151   :  { %v774_v56 = vadd.f32 -1.0, %v271_v53  ;;  %v281_v57 = vmul.f32 0.9048374, %v271_v53  ;;  %v292_v58 = vmul.f32 0.8187308, %v280_v54 }
 0x153   :  { %vm275_vm4 = vcmp.gt.f32.partialorder %v774_v56, 0.0  ;;  %v282_v59 = vadd.f32 %v281_v57, %v267_v45  ;;  %v293_v60 = vadd.f32 %v910_v34, %v292_v58 }
 0x154   :  { %v276_v61 = vsel %vm275_vm4, 1.0, %v1247_v0  ;;  %952 = vmatprep.mubr.msk.f32.mxu1 %vm275_vm4, %v1248_v26 }
 0x155   :  { %v283_v62 = vsub.f32 1.0, %v276_v61 }
 0x157   :  { %v284_v63 = vmul.f32 %v283_v62, %v282_v59 }
 0x159   :  { %v294_v1 = vmul.f32 0.9048374, %v284_v63  ;;  %v775_v2 = vadd.f32 -1.0, %v284_v63 }
 0x15b   :  { %v295_v3 = vadd.f32 %v294_v1, %v280_v54  ;;  %vm288_vm5 = vcmp.gt.f32.partialorder %v775_v2, 0.0 }
 0x15c   :  { %v289_v4 = vsel %vm288_vm5, 1.0, %v1247_v0  ;;  %953 = vmatmul.mubr.msk.f32.gmra.mrb[4].mxu1 %vm288_vm5, %v1248_v26 }
 0x15d   :  { %v296_v5 = vsub.f32 1.0, %v289_v4 }
 0x15f   :  { %v297_v6 = vmul.f32 %v296_v5, %v295_v3 }
 0x160   :  { %v992_v16 = vpop.f32.mrb[8].mxu0 }
 0x161   :  { %v776_v7 = vadd.f32 -1.0, %v297_v6  ;;  %v307_v8 = vmul.f32 0.9048374, %v297_v6  ;;  %v645_v17 = vpop.f32.mrb[9].mxu0 }
 0x162   :  { %v701_v18 = vmul.f32 0.8187308, %v645_v17  ;;  %706 = vst [vmem:[#allocation18 + $0x8] sm:$0xff] %v645_v17  ;;  %v710_v19 = vmul.f32 0.9048374, %v645_v17 }
 0x163   :  { %vm301_vm6 = vcmp.gt.f32.partialorder %v776_v7, 0.0  ;;  %v308_v9 = vadd.f32 %v307_v8, %v293_v60 }
 0x164   :  { %v302_v10 = vsel %vm301_vm6, 1.0, %v1247_v0  ;;  %955 = vmatprep.mubr.msk.f32.mxu1 %vm301_vm6, %v1248_v26  ;;  %v702_v20 = vadd.f32 %v992_v16, %v701_v18 }
 0x165   :  { %v309_v11 = vsub.f32 1.0, %v302_v10 }
 0x166   :  { %v711_v21 = vadd.f32 %v710_v19, %v702_v20  ;;  %v708_v32 = vmul.f32 0.8187308, %v702_v20 }
 0x167   :  { %v310_v12 = vmul.f32 %v309_v11, %v308_v9 }
 0x168   :  { %713 = vst [vmem:[#allocation18 + $0x10] sm:$0xff] %v711_v21  ;;  %v717_v36 = vmul.f32 0.9048374, %v711_v21 }
 0x169   :  { %v777_v13 = vadd.f32 -1.0, %v310_v12 }
 0x16b   :  { %vm314_vm7 = vcmp.gt.f32.partialorder %v777_v13, 0.0 }
 0x16c   :  { %956 = vmatmul.mubr.msk.f32.gmra.mrb[6].mxu1 %vm314_vm7, %v1248_v26 }
 0x21f   :  { %v951_v22 = vpop.f32.mrb[2].mxu1 }
 0x220   :  { %v426_v25 = vpop.f32.mrb[3].mxu1 }
 0x221   :  { %v493_v27 = vadd.f32 %v492_v23, %v426_v25 }
 0x222   :  { %v995_v35 = vpop.f32.mrb[10].mxu0 }
 0x223   :  { %v503_v30 = vmul.f32 0.8187308, %v493_v27  ;;  %v506_v31 = vadd.f32 %v505_v28, %v493_v27  ;;  %v655_v39 = vpop.f32.mrb[11].mxu0 }
 0x224   :  { %v709_v40 = vadd.f32 %v708_v32, %v655_v39 }
 0x225   :  { %v508_v33 = vmul.f32 %v507_v29, %v506_v31  ;;  %v504_v34 = vadd.f32 %v951_v22, %v503_v30 }
 0x226   :  { %v718_v43 = vadd.f32 %v717_v36, %v709_v40  ;;  %v715_v4 = vmul.f32 0.8187308, %v709_v40 }
 0x227   :  { %v516_v37 = vmul.f32 0.9048374, %v508_v33  ;;  %v782_v38 = vadd.f32 -1.0, %v508_v33  ;;  %v514_v47 = vmul.f32 0.8187308, %v504_v34 }
 0x228   :  { %720 = vst [vmem:[#allocation18 + $0x18] sm:$0xff] %v718_v43  ;;  %v724_v5 = vmul.f32 0.9048374, %v718_v43  ;;  %v716_v6 = vadd.f32 %v995_v35, %v715_v4 }
 0x229   :  { %vm511_vm8 = vcmp.gt.f32.partialorder %v782_v38, 0.0  ;;  %v517_v41 = vadd.f32 %v516_v37, %v504_v34 }
 0x22a   :  { %v512_v42 = vsel %vm511_vm8, 1.0, %v1247_v0  ;;  %996 = vmatprep.mubr.msk.f32.mxu1 %vm511_vm8, %v1248_v26  ;;  %v725_v7 = vadd.f32 %v724_v5, %v716_v6  ;;  %v722_v9 = vmul.f32 0.8187308, %v716_v6 }
 0x22b   :  { %v518_v44 = vsub.f32 1.0, %v512_v42 }
 0x22c   :  { %727 = vst [vmem:[#allocation18 + $0x20] sm:$0xff] %v725_v7 }
 0x22d   :  { %v519_v45 = vmul.f32 %v518_v44, %v517_v41 }
 0x22f   :  { %v954_v46 = vpop.f32.mrb[4].mxu1  ;;  %v783_v48 = vadd.f32 -1.0, %v519_v45  ;;  %v527_v51 = vmul.f32 0.9048374, %v519_v45 }
 0x230   :  { %v436_v49 = vpop.f32.mrb[5].mxu1 }
 0x231   :  { %v515_v50 = vadd.f32 %v514_v47, %v436_v49  ;;  %vm522_vm9 = vcmp.gt.f32.partialorder %v783_v48, 0.0 }
 0x232   :  { %v523_v52 = vsel %vm522_vm9, 1.0, %v1247_v0  ;;  %997 = vmatmul.mubr.msk.f32.vlgmr.msra.gmra.mrb[8].mxu1 %vm522_vm9, %v1248_v26 }
 0x233   :  { %v525_v53 = vmul.f32 0.8187308, %v515_v50  ;;  %v528_v54 = vadd.f32 %v527_v51, %v515_v50  ;;  %v529_v55 = vsub.f32 1.0, %v523_v52 }
 0x235   :  { %v526_v56 = vadd.f32 %v954_v46, %v525_v53  ;;  %v530_v57 = vmul.f32 %v529_v55, %v528_v54 }
 0x237   :  { %v538_v58 = vmul.f32 0.9048374, %v530_v57  ;;  %v784_v59 = vadd.f32 -1.0, %v530_v57 }
 0x239   :  { %vm533_vm10 = vcmp.gt.f32.partialorder %v784_v59, 0.0  ;;  %v539_v60 = vadd.f32 %v538_v58, %v526_v56 }
 0x23a   :  { %v534_v61 = vsel %vm533_vm10, 1.0, %v1247_v0  ;;  %999 = vmatprep.mubr.msk.f32.mxu1 %vm533_vm10, %v1248_v26  ;;  %v731_v0 = vmul.f32 0.9048374, %v725_v7 }
 0x23b   :  { %v540_v62 = vsub.f32 1.0, %v534_v61 }
 0x23d   :  { %v541_v63 = vmul.f32 %v540_v62, %v539_v60 }
 0x23f   :  { %v957_v1 = vpop.f32.mrb[6].mxu1  ;;  %v785_v2 = vadd.f32 -1.0, %v541_v63 }
 0x240   :  { %v446_v3 = vpop.f32.mrb[7].mxu1 }
 0x241   :  { %vm544_vm11 = vcmp.gt.f32.partialorder %v785_v2, 0.0 }
 0x242   :  { %1000 = vmatmul.mubr.msk.f32.gmra.mrb[10].mxu1 %vm544_vm11, %v1248_v26 }
 0x305   :  { %v998_v8 = vpop.f32.mrb[8].mxu1 }
 0x306   :  { %v665_v10 = vpop.f32.mrb[9].mxu1 }
 0x307   :  { %v723_v11 = vadd.f32 %v722_v9, %v665_v10 }
 0x309   :  { %v729_v12 = vmul.f32 0.8187308, %v723_v11  ;;  %v732_v13 = vadd.f32 %v731_v0, %v723_v11 }
 0x30b   :  { %734 = vst [vmem:[#allocation18 + $0x28] sm:$0xff] %v732_v13  ;;  %v738_v14 = vmul.f32 0.9048374, %v732_v13  ;;  %v730_v15 = vadd.f32 %v998_v8, %v729_v12 }
 0x30d   :  { %v739_v16 = vadd.f32 %v738_v14, %v730_v15  ;;  %v736_v18 = vmul.f32 0.8187308, %v730_v15 }
 0x30f   :  { %741 = vst [vmem:[#allocation18 + $0x30] sm:$0xff] %v739_v16  ;;  %v745_v20 = vmul.f32 0.9048374, %v739_v16 }
 0x315   :  { %v1001_v17 = vpop.f32.mrb[10].mxu1 }
 0x316   :  { %v675_v26 = vpop.f32.mrb[11].mxu1 }
 0x317   :  { %v737_v19 = vadd.f32 %v736_v18, %v675_v26 }
 0x319   :  { %v746_v21 = vadd.f32 %v745_v20, %v737_v19 }
 0x31b   :  { %748 = vst [vmem:[#allocation18 + $0x38] sm:$0xff] %v746_v21 }
 0x31c   :  { %1222 = shalt.err (!%p1219_p8)
}
 0x31d   :  { %s1223_s15 = scalar_lea.hbm %s1397_s4, 1024 }
 0x31e   :  { %p1224_p9 = scmp.ne.s32.totalorder %s1397_s4, %s1223_s15  ;;  %p1227_p10 = scmp.lt.u32.totalorder %s1223_s15, %s1397_s4 }
 0x320   :  { %p1229_p11 = pnand %p1227_p10, %p1224_p9 }
 0x322   :  { %1232 = shalt.err (!%p1229_p11)
}
 0x323   :  { %762 = dma.vmem_to_hbm [thread:$0]  %s757_s12, 1024, %s1397_s4, [#allocation12], %s1243_s27, %s1243_s27, %s1244_s28  }
 0x324   :  { %1239 = dma.done.wait [#allocation12], 1024  }
 0x325   :  { %1240 = vsyncadd [#allocation12], 4294966272 }
 0x326   :  { %766 = vsyncpa [#allocation11], 1 }
 0x327   :  { %767 = vsyncpa [#allocation14], 1 }
 0x328   :  { %768 = vsyncpa [#allocation17], 1 }
 0x329   :  { %769 = vsyncpa [#allocation12], 1 }

</bundles_post_ra>
